<compile_context>
chip_gen: v5e
topology: v5e:2x2
jax: 0.10.0
libtpu: 0.0.40
codegen_flags: <defaults>
</compile_context>

<pallas_src>
import functools

import numpy as np
import jax
import jax.numpy as jnp
from jax.experimental import pallas as pl
from jax.experimental.pallas import tpu as pltpu


def _affine_grid_kernel(ca_ref, cb_ref, ct_ref, out_ref, *,
                        out_w, inv_w, inv_wm1, inv_hm1, tile):
    """One lane-dense tile of the fused affine grid.

    ca/cb/ct: (B, T) per-lane-parity theta coefficients (even lanes = X-row coeffs
              [a,b,tx], odd lanes = Y-row coeffs [c,d,ty]); constant index_map so
              they are DMA'd once and stay resident in VMEM.
    out:      (B, T) slice of the flattened (B, H*W*2) output, where the flattened
              index is g = (h*W + w)*2 + channel.
    """
    i = pl.program_id(0)
    t = out_ref.shape[1]

    # Generate the sampling basis in-kernel (no HBM phi reads).  Index math is done
    # in f32 with exact floors: g < 2^24, and (p+0.5)/W is > 2e-3 away from the next
    # integer while the f32 error is < 1e-4 for realistic grid sizes.
    lane = jax.lax.broadcasted_iota(jnp.int32, (1, t), 1)
    gf = (lane + i * tile).astype(jnp.float32)        # global flattened lane index
    pf = jnp.floor(gf * 0.5)                          # pixel index  p = g // 2 (exact)
    hf = jnp.floor((pf + 0.5) * inv_w)                # row index    h = p // W (exact)
    wf = pf - hf * out_w                              # col index    w = p %  W (exact)
    x = wf * inv_wm1 - 1.0                            # align_corners=True coords
    y = hf * inv_hm1 - 1.0

    # K = 3 contraction stays on the VPU (MXU would be wasted); the parity selection
    # is baked into the coefficient panels, so this is 3 FMAs + one unmasked,
    # lane-dense full-width store per tile.
    out_ref[...] = ca_ref[...] * x + cb_ref[...] * y + ct_ref[...]


def _choose_tile_lanes(batch, total_lanes, max_tile_lanes=None,
                       target_bytes=1 << 20, abs_max_lanes=16384):
    """Lane width per grid step along the flattened (H*W*2) output axis.

    Must be a multiple of 128 (unmasked vst) and an exact divisor of total_lanes
    (every grid step is a full block).  Sized so the double-buffered f32 output
    tile plus the resident theta panels stay well inside the smallest default
    scoped-VMEM budget across v5e/v6e/v7x.
    """
    if total_lanes % 128 != 0:
        return total_lanes                      # tiny grid: one full-extent block
    budget_lanes = (target_bytes // (4 * max(batch, 1))) // 128 * 128
    cap = min(budget_lanes, abs_max_lanes)
    if max_tile_lanes is not None:
        cap = min(cap, max_tile_lanes)
    cap = max(cap, 128)
    units = total_lanes // 128
    best = 128
    for d in range(1, units + 1):
        if units % d == 0 and d * 128 <= cap:
            best = d * 128
    return best


def make_affine_grid_gen(out_h=16, out_w=16, out_ch=3, max_tile_lanes=None):
    """Returns forward(theta) equivalent to AffineGridGen(out_h, out_w, out_ch).forward.

    out_ch only sets the channel count of the size tuple handed to F.affine_grid;
    it does not affect the returned sampling grid, so it is accepted but unused.
    """
    del out_ch
    total_lanes = out_h * out_w * 2
    inv_w = 1.0 / float(out_w)
    # Guarded for degenerate out_w == 1 / out_h == 1 (linspace(-1, 1, 1) == [-1]).
    inv_wm1 = 2.0 / float(max(out_w - 1, 1))
    inv_hm1 = 2.0 / float(max(out_h - 1, 1))

    @jax.jit
    def forward(theta):
        # Accepts (B, 2, 3) or anything viewable as (-1, 2, 3), like the PyTorch module.
        theta = theta.reshape(-1, 2, 3).astype(jnp.float32)
        b = theta.shape[0]
        tile = _choose_tile_lanes(b, total_lanes, max_tile_lanes)
        num_tiles = total_lanes // tile

        # Per-lane-parity coefficient panels built once per call in the wrapper
        # (JAX does not CSE per-step broadcasts, so the kernel body stays pure FMAs).
        # theta[:, 0, :] = [a, b, tx] (X row), theta[:, 1, :] = [c, d, ty] (Y row);
        # tiling the (B, 2) columns gives the [X, Y, X, Y, ...] lane pattern.
        reps = tile // 2
        c_a = jnp.tile(theta[:, :, 0], (1, reps))     # even lanes: a,  odd lanes: c
        c_b = jnp.tile(theta[:, :, 1], (1, reps))     # even lanes: b,  odd lanes: d
        c_t = jnp.tile(theta[:, :, 2], (1, reps))     # even lanes: tx, odd lanes: ty

        kernel = functools.partial(
            _affine_grid_kernel,
            out_w=out_w, inv_w=inv_w, inv_wm1=inv_wm1, inv_hm1=inv_hm1, tile=tile)

        coef_spec = pl.BlockSpec((b, tile), lambda i: (0, 0))   # DMA'd once, resident

        out = pl.pallas_call(
            kernel,
            out_shape=jax.ShapeDtypeStruct((b, total_lanes), jnp.float32),
            grid=(num_tiles,),
            in_specs=[coef_spec, coef_spec, coef_spec],
            out_specs=pl.BlockSpec((b, tile), lambda i: (0, i)),
            compiler_params=pltpu.CompilerParams(
                dimension_semantics=("parallel",),     # shards across v7x's 2 TCs
                vmem_limit_bytes=32 * 1024 * 1024,     # <= physical on v5e/v6e/v7x
            ),
            cost_estimate=pl.CostEstimate(
                flops=5 * b * total_lanes,
                transcendentals=0,
                bytes_accessed=(b * total_lanes + 3 * b * tile) * 4,
            ),
        )(c_a, c_b, c_t)

        # Lossless reshape: the X/Y interleave was fused in-kernel, so no transpose.
        return out.reshape(b, out_h, out_w, 2)

    return forward


def _reference(theta_np, out_h, out_w):
    """NumPy reference for F.affine_grid (align_corners=True convention)."""
    theta_np = theta_np.reshape(-1, 2, 3).astype(np.float64)
    xs = np.linspace(-1.0, 1.0, out_w)
    ys = np.linspace(-1.0, 1.0, out_h)
    gX, gY = np.meshgrid(xs, ys)
    base = np.stack([gX, gY, np.ones_like(gX)], axis=-1)           # (H, W, 3)
    return np.einsum("hwk,bck->bhwc", base, theta_np).astype(np.float32)


if __name__ == "__main__":
    key = jax.random.PRNGKey(0)
    k1, k2 = jax.random.split(key)

    # Config 1: small shapes matching the module's test-style usage (B=2, 16x16).
    B1, H1, W1 = 2, 16, 16
    identity = jnp.tile(
        jnp.array([[1.0, 0.0, 0.0], [0.0, 1.0, 0.0]], jnp.float32), (B1, 1, 1))
    theta1 = identity + 0.1 * jax.random.normal(k1, (B1, 2, 3), dtype=jnp.float32)
    fwd1 = make_affine_grid_gen(out_h=H1, out_w=W1, out_ch=3)
    grid1 = jax.block_until_ready(fwd1(theta1))
    np.testing.assert_allclose(
        np.asarray(grid1), _reference(np.asarray(theta1), H1, W1), rtol=1e-5, atol=1e-5)
    assert grid1.shape == (B1, H1, W1, 2)

    # Config 2: non-power-of-2 width and a multi-step tiled/pipelined grid
    # (H*W*2 = 5120 lanes, forced 1024-lane tiles -> 5 grid steps).
    B2, H2, W2 = 3, 64, 40
    theta2 = 0.5 * jax.random.normal(k2, (B2, 2, 3), dtype=jnp.float32)
    fwd2 = make_affine_grid_gen(out_h=H2, out_w=W2, out_ch=3, max_tile_lanes=1024)
    grid2 = jax.block_until_ready(fwd2(theta2))
    np.testing.assert_allclose(
        np.asarray(grid2), _reference(np.asarray(theta2), H2, W2), rtol=1e-5, atol=1e-5)
    assert grid2.shape == (B2, H2, W2, 2)

    print("KERNEL_OK")
</pallas_src>

<mosaic_0001>
module attributes {stable_mosaic.version = 11 : i64} {
  func.func @_affine_grid_kernel(%arg0: i32, %arg1: memref<2x512xf32, #tpu.memory_space<vmem>>, %arg2: memref<2x512xf32, #tpu.memory_space<vmem>>, %arg3: memref<2x512xf32, #tpu.memory_space<vmem>>, %arg4: memref<2x512xf32, #tpu.memory_space<vmem>>) attributes {dimension_semantics = [#tpu.dimension_semantics<parallel>], iteration_bounds = array<i64: 1>, scalar_prefetch = 0 : i64, scratch_operands = 0 : i64, tpu.core_type = #tpu.core_type<tc>, window_params = [{pipeline_mode = #tpu.pipeline_mode<synchronous>, transform_indices = @transform_0, window_bounds = array<i64: 2, 512>}, {pipeline_mode = #tpu.pipeline_mode<synchronous>, transform_indices = @transform_1, window_bounds = array<i64: 2, 512>}, {pipeline_mode = #tpu.pipeline_mode<synchronous>, transform_indices = @transform_2, window_bounds = array<i64: 2, 512>}, {transform_indices = @transform_3, window_bounds = array<i64: 2, 512>}]} {
    %0 = tpu.iota {dimensions = array<i32: 1>} : vector<1x512xi32>
    %c512_i32 = arith.constant 512 : i32
    %1 = arith.muli %arg0, %c512_i32 : i32
    %2 = vector.broadcast %1 : i32 to vector<1x512xi32>
    %3 = arith.addi %0, %2 : vector<1x512xi32>
    %4 = arith.sitofp %3 : vector<1x512xi32> to vector<1x512xf32>
    %cst = arith.constant 5.000000e-01 : f32
    %5 = vector.broadcast %cst : f32 to vector<1x512xf32>
    %6 = arith.mulf %4, %5 : vector<1x512xf32>
    %7 = math.floor %6 : vector<1x512xf32>
    %cst_0 = arith.constant 5.000000e-01 : f32
    %8 = vector.broadcast %cst_0 : f32 to vector<1x512xf32>
    %9 = arith.addf %7, %8 : vector<1x512xf32>
    %cst_1 = arith.constant 6.250000e-02 : f32
    %10 = vector.broadcast %cst_1 : f32 to vector<1x512xf32>
    %11 = arith.mulf %9, %10 : vector<1x512xf32>
    %12 = math.floor %11 : vector<1x512xf32>
    %cst_2 = arith.constant 1.600000e+01 : f32
    %13 = vector.broadcast %cst_2 : f32 to vector<1x512xf32>
    %14 = arith.mulf %12, %13 : vector<1x512xf32>
    %15 = arith.subf %7, %14 : vector<1x512xf32>
    %cst_3 = arith.constant 0.13333334 : f32
    %16 = vector.broadcast %cst_3 : f32 to vector<1x512xf32>
    %17 = arith.mulf %15, %16 : vector<1x512xf32>
    %cst_4 = arith.constant 1.000000e+00 : f32
    %18 = vector.broadcast %cst_4 : f32 to vector<1x512xf32>
    %19 = arith.subf %17, %18 : vector<1x512xf32>
    %cst_5 = arith.constant 0.13333334 : f32
    %20 = vector.broadcast %cst_5 : f32 to vector<1x512xf32>
    %21 = arith.mulf %12, %20 : vector<1x512xf32>
    %cst_6 = arith.constant 1.000000e+00 : f32
    %22 = vector.broadcast %cst_6 : f32 to vector<1x512xf32>
    %23 = arith.subf %21, %22 : vector<1x512xf32>
    %c0 = arith.constant 0 : index
    %c0_7 = arith.constant 0 : index
    %24 = vector.load %arg1[%c0, %c0_7] : memref<2x512xf32, #tpu.memory_space<vmem>>, vector<2x512xf32>
    %25 = vector.broadcast %19 : vector<1x512xf32> to vector<2x512xf32>
    %26 = arith.mulf %24, %25 : vector<2x512xf32>
    %c0_8 = arith.constant 0 : index
    %c0_9 = arith.constant 0 : index
    %27 = vector.load %arg2[%c0_8, %c0_9] : memref<2x512xf32, #tpu.memory_space<vmem>>, vector<2x512xf32>
    %28 = vector.broadcast %23 : vector<1x512xf32> to vector<2x512xf32>
    %29 = arith.mulf %27, %28 : vector<2x512xf32>
    %30 = arith.addf %26, %29 : vector<2x512xf32>
    %c0_10 = arith.constant 0 : index
    %c0_11 = arith.constant 0 : index
    %31 = vector.load %arg3[%c0_10, %c0_11] : memref<2x512xf32, #tpu.memory_space<vmem>>, vector<2x512xf32>
    %32 = arith.addf %30, %31 : vector<2x512xf32>
    %c0_12 = arith.constant 0 : index
    %c0_13 = arith.constant 0 : index
    %33 = vector.load %arg4[%c0_12, %c0_13] : memref<2x512xf32, #tpu.memory_space<vmem>>, vector<2x512xf32>
    tpu.vector_store %arg4[%c0_12, %c0_13], %32 {strides = array<i32>} : memref<2x512xf32, #tpu.memory_space<vmem>>, vector<2x512xf32>,
    return
  }
  func.func @transform_0(%arg0: i32) -> (i32, i32) {
    %c0_i32 = arith.constant 0 : i32
    %c0_i32_0 = arith.constant 0 : i32
    %c0_i32_1 = arith.constant 0 : i32
    return %c0_i32, %c0_i32_0 : i32, i32
  }
  func.func @transform_1(%arg0: i32) -> (i32, i32) {
    %c0_i32 = arith.constant 0 : i32
    %c0_i32_0 = arith.constant 0 : i32
    %c0_i32_1 = arith.constant 0 : i32
    return %c0_i32, %c0_i32_0 : i32, i32
  }
  func.func @transform_2(%arg0: i32) -> (i32, i32) {
    %c0_i32 = arith.constant 0 : i32
    %c0_i32_0 = arith.constant 0 : i32
    %c0_i32_1 = arith.constant 0 : i32
    return %c0_i32, %c0_i32_0 : i32, i32
  }
  func.func @transform_3(%arg0: i32) -> (i32, i32) {
    %c0_i32 = arith.constant 0 : i32
    %c0_i32_0 = arith.constant 0 : i32
    return %c0_i32, %arg0 : i32, i32
  }
}

</mosaic_0001>

<bundles_post_ra>
// kernel: tile.23
= control target key start
LH: loop header
LB: loop body
LE: loop exit
PB: predicated region body
PF: predicated region fallthrough
CT: control target
= control target key end

     0   :  { %vm5_vm0 = vcmask 1041409   ;;  %vm9_vm1 = vcmask 1042434   ;;  %vm13_vm2 = vcmask 1043459   ;;  %vm17_vm3 = vcmask 1044484   ;;  %s3156_s19 = smov 126   ;;  %s3157_s7 = smov 122   ;;  %s5489_s0 = inlined_call_operand.vmem [shape: f32[2,256,2], index: 0, kind: input, shape index: {}]   ;;  %s5490_s1 = inlined_call_operand.vmem [shape: f32[2,512], index: 1, kind: output, shape index: {}]  }
   0x1   :  { %v2586_v0 = vld [vmem:[%s5489_s0 + $0x3f] sm:$0x1]   ;;  %vm21_vm4 = vcmask 1045509   ;;  %vm25_vm5 = vcmask 1046534   ;;  %vm29_vm6 = vcmask 1047559   ;;  %s3158_s9 = smov 124  }
   0x2   :  { %v2587_v1 = vld [vmem:[%s5489_s0 + $0x13e] sm:$0x2]   ;;  %v2602_v10 = vld [vmem:[%s5489_s0 + $0x3d] sm:$0x1]   ;;  %v2594_v25 = vld [vmem:[%s5489_s0 + $0x3e] sm:$0x1]  }
   0x3   :  { %v40_v2 = vsel %vm5_vm0, %v2587_v1, %v2586_v0  ;;  %v2588_v3 = vld [vmem:[%s5489_s0 + $0x7d] sm:$0x4]   ;;  %v2603_v11 = vld [vmem:[%s5489_s0 + $0x13c] sm:$0x2]   ;;  %v2595_v26 = vld [vmem:[%s5489_s0 + $0x13d] sm:$0x2]  }
   0x4   :  { %v2589_v4 = vld [vmem:[%s5489_s0 + $0x17c] sm:$0x8]   ;;  %v44_v6 = vsel %vm9_vm1, %v2588_v3, %v40_v2  ;;  %v2604_v12 = vld [vmem:[%s5489_s0 + $0x7b] sm:$0x4]   ;;  %v120_v15 = vsel %vm5_vm0, %v2603_v11, %v2602_v10  ;;  %v2596_v27 = vld [vmem:[%s5489_s0 + $0x7c] sm:$0x4]   ;;  %v80_v30 = vsel %vm5_vm0, %v2595_v26, %v2594_v25 }
   0x5   :  { %v2590_v5 = vld [vmem:[%s5489_s0 + $0xbb] sm:$0x10]   ;;  %v48_v9 = vsel %vm13_vm2, %v2589_v4, %v44_v6  ;;  %v2605_v16 = vld [vmem:[%s5489_s0 + $0x17a] sm:$0x8]   ;;  %v124_v19 = vsel %vm9_vm1, %v2604_v12, %v120_v15  ;;  %v2597_v31 = vld [vmem:[%s5489_s0 + $0x17b] sm:$0x8]   ;;  %v84_v34 = vsel %vm9_vm1, %v2596_v27, %v80_v30 }
   0x6   :  { %v2591_v7 = vld [vmem:[%s5489_s0 + $0x1ba] sm:$0x20]   ;;  %v52_v13 = vsel %vm17_vm3, %v2590_v5, %v48_v9  ;;  %v2606_v17 = vld [vmem:[%s5489_s0 + $0xb9] sm:$0x10]   ;;  %v128_v24 = vsel %vm13_vm2, %v2605_v16, %v124_v19  ;;  %v2598_v32 = vld [vmem:[%s5489_s0 + $0xba] sm:$0x10]   ;;  %v88_v39 = vsel %vm13_vm2, %v2597_v31, %v84_v34 }
   0x7   :  { %v2592_v8 = vld [vmem:[%s5489_s0 + $0xf9] sm:$0x40]   ;;  %v56_v18 = vsel %vm21_vm4, %v2591_v7, %v52_v13  ;;  %v2607_v20 = vld [vmem:[%s5489_s0 + $0x1b8] sm:$0x20]   ;;  %v132_v29 = vsel %vm17_vm3, %v2606_v17, %v128_v24  ;;  %v2599_v35 = vld [vmem:[%s5489_s0 + $0x1b9] sm:$0x20]   ;;  %v92_v44 = vsel %vm17_vm3, %v2598_v32, %v88_v39 }
   0x8   :  { %v2593_v14 = vld [vmem:[%s5489_s0 + $0x1f8] sm:$0x80]   ;;  %v2608_v21 = vld [vmem:[%s5489_s0 + $0xf7] sm:$0x40]   ;;  %v60_v23 = vsel %vm25_vm5, %v2592_v8, %v56_v18  ;;  %v136_v33 = vsel %vm21_vm4, %v2607_v20, %v132_v29  ;;  %v2600_v36 = vld [vmem:[%s5489_s0 + $0xf8] sm:$0x40]   ;;  %v96_v48 = vsel %vm21_vm4, %v2599_v35, %v92_v44 }
   0x9   :  { %v2609_v22 = vld [vmem:[%s5489_s0 + $0x1f6] sm:$0x80]   ;;  %v64_v28 = vsel %vm29_vm6, %v2593_v14, %v60_v23  ;;  %v2610_v37 = vld [vmem:[%s5489_s0 + $0x3c] sm:$0x1]   ;;  %v140_v38 = vsel %vm25_vm5, %v2608_v21, %v136_v33  ;;  %v2601_v45 = vld [vmem:[%s5489_s0 + $0x1f7] sm:$0x80]   ;;  %v100_v53 = vsel %vm25_vm5, %v2600_v36, %v96_v48 }
   0xa   :  { %65 = vrot.lane.b32.xlu0 %v64_v28, %s3156_s19  ;;  %v2611_v40 = vld [vmem:[%s5489_s0 + $0x13b] sm:$0x2]   ;;  %v144_v43 = vsel %vm29_vm6, %v2609_v22, %v140_v38  ;;  %v2634_v52 = vld [vmem:[%s5489_s0 + $0x39] sm:$0x1]   ;;  %v104_v58 = vsel %vm29_vm6, %v2601_v45, %v100_v53  ;;  %v2642_v3 = vld [vmem:[%s5489_s0 + $0x38] sm:$0x1]  }
   0xb   :  { %v2612_v41 = vld [vmem:[%s5489_s0 + $0x7a] sm:$0x4]   ;;  %v160_v46 = vsel %vm5_vm0, %v2611_v40, %v2610_v37  ;;  %145 = vrot.lane.b32.xlu1 %v144_v43, %s3157_s7  ;;  %v2635_v55 = vld [vmem:[%s5489_s0 + $0x138] sm:$0x2]   ;;  %v2643_v4 = vld [vmem:[%s5489_s0 + $0x137] sm:$0x2]  }
   0xc   :  { %v2613_v42 = vld [vmem:[%s5489_s0 + $0x179] sm:$0x8]   ;;  %v164_v49 = vsel %vm9_vm1, %v2612_v41, %v160_v46  ;;  %v2636_v56 = vld [vmem:[%s5489_s0 + $0x77] sm:$0x4]   ;;  %v280_v61 = vsel %vm5_vm0, %v2635_v55, %v2634_v52  ;;  %v320_v7 = vsel %vm5_vm0, %v2643_v4, %v2642_v3  ;;  %v2644_v8 = vld [vmem:[%s5489_s0 + $0x76] sm:$0x4]  }
   0xd   :  { %v2614_v47 = vld [vmem:[%s5489_s0 + $0xb8] sm:$0x10]   ;;  %v168_v54 = vsel %vm13_vm2, %v2613_v42, %v164_v49  ;;  %v2637_v57 = vld [vmem:[%s5489_s0 + $0x176] sm:$0x8]   ;;  %v284_v1 = vsel %vm9_vm1, %v2636_v56, %v280_v61  ;;  %v2645_v9 = vld [vmem:[%s5489_s0 + $0x175] sm:$0x8]   ;;  %v324_v14 = vsel %vm9_vm1, %v2644_v8, %v320_v7 }
   0xe   :  { %v2615_v50 = vld [vmem:[%s5489_s0 + $0x1b7] sm:$0x20]   ;;  %v172_v59 = vsel %vm17_vm3, %v2614_v47, %v168_v54  ;;  %v2638_v62 = vld [vmem:[%s5489_s0 + $0xb5] sm:$0x10]   ;;  %v288_v6 = vsel %vm13_vm2, %v2637_v57, %v284_v1  ;;  %v2646_v10 = vld [vmem:[%s5489_s0 + $0xb4] sm:$0x10]   ;;  %v328_v17 = vsel %vm13_vm2, %v2645_v9, %v324_v14 }
   0xf   :  { %v2616_v51 = vld [vmem:[%s5489_s0 + $0xf6] sm:$0x40]   ;;  %v2639_v63 = vld [vmem:[%s5489_s0 + $0x1b4] sm:$0x20]   ;;  %v176_v0 = vsel %vm21_vm4, %v2615_v50, %v172_v59  ;;  %v292_v12 = vsel %vm17_vm3, %v2638_v62, %v288_v6  ;;  %v2647_v15 = vld [vmem:[%s5489_s0 + $0x1b3] sm:$0x20]   ;;  %v332_v22 = vsel %vm17_vm3, %v2646_v10, %v328_v17 }
  0x10   :  { %v2617_v60 = vld [vmem:[%s5489_s0 + $0x1f5] sm:$0x80]   ;;  %v2640_v2 = vld [vmem:[%s5489_s0 + $0xf3] sm:$0x40]   ;;  %v180_v5 = vsel %vm25_vm5, %v2616_v51, %v176_v0  ;;  %v296_v16 = vsel %vm21_vm4, %v2639_v63, %v292_v12  ;;  %v2648_v18 = vld [vmem:[%s5489_s0 + $0xf2] sm:$0x40]   ;;  %v336_v27 = vsel %vm21_vm4, %v2647_v15, %v332_v22 }
  0x11   :  { %v184_v11 = vsel %vm29_vm6, %v2617_v60, %v180_v5  ;;  %v2641_v13 = vld [vmem:[%s5489_s0 + $0x1f2] sm:$0x80]   ;;  %v2658_v19 = vld [vmem:[%s5489_s0 + $0x36] sm:$0x1]   ;;  %v300_v21 = vsel %vm25_vm5, %v2640_v2, %v296_v16  ;;  %s3159_s26 = smov 120   ;;  %v340_v35 = vsel %vm25_vm5, %v2648_v18, %v336_v27  ;;  %s3160_s22 = smov 114  }
  0x12   :  { %105 = vrot.lane.b32.xlu0 %v104_v58, %s3158_s9  ;;  %v2659_v20 = vld [vmem:[%s5489_s0 + $0x135] sm:$0x2]   ;;  %v2666_v31 = vld [vmem:[%s5489_s0 + $0x35] sm:$0x1]   ;;  %v304_v34 = vsel %vm29_vm6, %v2641_v13, %v300_v21  ;;  %v2649_v36 = vld [vmem:[%s5489_s0 + $0x1f1] sm:$0x80]  }
  0x13   :  { %v400_v23 = vsel %vm5_vm0, %v2659_v20, %v2658_v19  ;;  %v2660_v24 = vld [vmem:[%s5489_s0 + $0x74] sm:$0x4]   ;;  %185 = vrot.lane.b32.xlu1 %v184_v11, %s3159_s26  ;;  %v2667_v32 = vld [vmem:[%s5489_s0 + $0x134] sm:$0x2]   ;;  %v2618_v46 = vld [vmem:[%s5489_s0 + $0x3b] sm:$0x1]   ;;  %v344_v49 = vsel %vm29_vm6, %v2649_v36, %v340_v35 }
  0x14   :  { %v2661_v25 = vld [vmem:[%s5489_s0 + $0x173] sm:$0x8]   ;;  %v404_v28 = vsel %vm9_vm1, %v2660_v24, %v400_v23  ;;  %v2668_v33 = vld [vmem:[%s5489_s0 + $0x73] sm:$0x4]   ;;  %v440_v38 = vsel %vm5_vm0, %v2667_v32, %v2666_v31  ;;  %v2619_v47 = vld [vmem:[%s5489_s0 + $0x13a] sm:$0x2]  }
  0x15   :  { %v2662_v26 = vld [vmem:[%s5489_s0 + $0xb2] sm:$0x10]   ;;  %v408_v30 = vsel %vm13_vm2, %v2661_v25, %v404_v28  ;;  %v2669_v39 = vld [vmem:[%s5489_s0 + $0x172] sm:$0x8]   ;;  %v444_v42 = vsel %vm9_vm1, %v2668_v33, %v440_v38  ;;  %v2620_v48 = vld [vmem:[%s5489_s0 + $0x79] sm:$0x4]   ;;  %v200_v53 = vsel %vm5_vm0, %v2619_v47, %v2618_v46 }
  0x16   :  { %v2663_v29 = vld [vmem:[%s5489_s0 + $0x1b1] sm:$0x20]   ;;  %v412_v37 = vsel %vm17_vm3, %v2662_v26, %v408_v30  ;;  %v2670_v40 = vld [vmem:[%s5489_s0 + $0xb1] sm:$0x10]   ;;  %v448_v45 = vsel %vm13_vm2, %v2669_v39, %v444_v42  ;;  %v2621_v54 = vld [vmem:[%s5489_s0 + $0x178] sm:$0x8]   ;;  %v204_v56 = vsel %vm9_vm1, %v2620_v48, %v200_v53 }
  0x17   :  { %v2664_v41 = vld [vmem:[%s5489_s0 + $0xf0] sm:$0x40]   ;;  %v2671_v43 = vld [vmem:[%s5489_s0 + $0x1b0] sm:$0x20]   ;;  %v416_v44 = vsel %vm21_vm4, %v2663_v29, %v412_v37  ;;  %v452_v51 = vsel %vm17_vm3, %v2670_v40, %v448_v45  ;;  %v2622_v55 = vld [vmem:[%s5489_s0 + $0xb7] sm:$0x10]   ;;  %v208_v62 = vsel %vm13_vm2, %v2621_v54, %v204_v56 }
  0x18   :  { %v2665_v50 = vld [vmem:[%s5489_s0 + $0x1ef] sm:$0x80]   ;;  %v2672_v52 = vld [vmem:[%s5489_s0 + $0xef] sm:$0x40]   ;;  %v2623_v57 = vld [vmem:[%s5489_s0 + $0x1b6] sm:$0x20]   ;;  %v420_v60 = vsel %vm25_vm5, %v2664_v41, %v416_v44  ;;  %v456_v61 = vsel %vm21_vm4, %v2671_v43, %v452_v51  ;;  %v212_v3 = vsel %vm17_vm3, %v2622_v55, %v208_v62 }
  0x19   :  { %v2624_v58 = vld [vmem:[%s5489_s0 + $0xf5] sm:$0x40]   ;;  %v2682_v59 = vld [vmem:[%s5489_s0 + $0x33] sm:$0x1]   ;;  %s3161_s14 = smov 112   ;;  %v216_v7 = vsel %vm21_vm4, %v2623_v57, %v212_v3  ;;  %v424_v11 = vsel %vm29_vm6, %v2665_v50, %v420_v60  ;;  %v460_v12 = vsel %vm25_vm5, %v2672_v52, %v456_v61  ;;  %s3162_s6 = smov 118  }
  0x1a   :  { %305 = vrot.lane.b32.xlu0 %v304_v34, %s3160_s22  ;;  %v2683_v63 = vld [vmem:[%s5489_s0 + $0x132] sm:$0x2]   ;;  %v2673_v2 = vld [vmem:[%s5489_s0 + $0x1ee] sm:$0x80]   ;;  %v2625_v4 = vld [vmem:[%s5489_s0 + $0x1f4] sm:$0x80]   ;;  %v220_v13 = vsel %vm25_vm5, %v2624_v58, %v216_v7 }
  0x1b   :  { %v2684_v0 = vld [vmem:[%s5489_s0 + $0x71] sm:$0x4]   ;;  %345 = vrot.lane.b32.xlu1 %v344_v49, %s3161_s14  ;;  %v520_v5 = vsel %vm5_vm0, %v2683_v63, %v2682_v59  ;;  %v2690_v10 = vld [vmem:[%s5489_s0 + $0x32] sm:$0x1]   ;;  %v224_v18 = vsel %vm29_vm6, %v2625_v4, %v220_v13  ;;  %v2626_v26 = vld [vmem:[%s5489_s0 + $0x3a] sm:$0x1]   ;;  %v464_v28 = vsel %vm29_vm6, %v2673_v2, %v460_v12 }
  0x1c   :  { %v2685_v1 = vld [vmem:[%s5489_s0 + $0x170] sm:$0x8]   ;;  %v524_v8 = vsel %vm9_vm1, %v2684_v0, %v520_v5  ;;  %v2691_v15 = vld [vmem:[%s5489_s0 + $0x131] sm:$0x2]   ;;  %225 = vrot.lane.b32.xlu2 %v224_v18, %s3162_s6  ;;  %v2627_v27 = vld [vmem:[%s5489_s0 + $0x139] sm:$0x2]  }
  0x1d   :  { %v2686_v6 = vld [vmem:[%s5489_s0 + $0xaf] sm:$0x10]   ;;  %v528_v14 = vsel %vm13_vm2, %v2685_v1, %v524_v8  ;;  %v2692_v16 = vld [vmem:[%s5489_s0 + $0x70] sm:$0x4]   ;;  %v560_v21 = vsel %vm5_vm0, %v2691_v15, %v2690_v10  ;;  %s3163_s13 = smov 108   ;;  %v240_v31 = vsel %vm5_vm0, %v2627_v27, %v2626_v26  ;;  %s3164_s5 = smov 106  }
  0x1e   :  { %v2687_v9 = vld [vmem:[%s5489_s0 + $0x1ae] sm:$0x20]   ;;  %v2693_v17 = vld [vmem:[%s5489_s0 + $0x16f] sm:$0x8]   ;;  %v532_v19 = vsel %vm17_vm3, %v2686_v6, %v528_v14  ;;  %v564_v24 = vsel %vm9_vm1, %v2692_v16, %v560_v21  ;;  %v2628_v32 = vld [vmem:[%s5489_s0 + $0x78] sm:$0x4]  }
  0x1f   :  { %v2688_v20 = vld [vmem:[%s5489_s0 + $0xed] sm:$0x40]   ;;  %v2694_v22 = vld [vmem:[%s5489_s0 + $0xae] sm:$0x10]   ;;  %v536_v23 = vsel %vm21_vm4, %v2687_v9, %v532_v19  ;;  %v568_v30 = vsel %vm13_vm2, %v2693_v17, %v564_v24  ;;  %v2629_v33 = vld [vmem:[%s5489_s0 + $0x177] sm:$0x8]   ;;  %v244_v37 = vsel %vm9_vm1, %v2628_v32, %v240_v31 }
  0x20   :  { %v2695_v25 = vld [vmem:[%s5489_s0 + $0x1ad] sm:$0x20]   ;;  %v2689_v29 = vld [vmem:[%s5489_s0 + $0x1ec] sm:$0x80]   ;;  %v2630_v34 = vld [vmem:[%s5489_s0 + $0xb6] sm:$0x10]   ;;  %v572_v35 = vsel %vm17_vm3, %v2694_v22, %v568_v30  ;;  %v540_v40 = vsel %vm25_vm5, %v2688_v20, %v536_v23  ;;  %v248_v42 = vsel %vm13_vm2, %v2629_v33, %v244_v37 }
  0x21   :  { %v2696_v36 = vld [vmem:[%s5489_s0 + $0xec] sm:$0x40]   ;;  %v2631_v38 = vld [vmem:[%s5489_s0 + $0x1b5] sm:$0x20]   ;;  %v576_v41 = vsel %vm21_vm4, %v2695_v25, %v572_v35  ;;  %v2706_v44 = vld [vmem:[%s5489_s0 + $0x30] sm:$0x1]   ;;  %v252_v46 = vsel %vm17_vm3, %v2630_v34, %v248_v42  ;;  %v544_v55 = vsel %vm29_vm6, %v2689_v29, %v540_v40 }
  0x22   :  { %425 = vrot.lane.b32.xlu0 %v424_v11, %s3163_s13  ;;  %v2632_v39 = vld [vmem:[%s5489_s0 + $0xf4] sm:$0x40]   ;;  %v2707_v45 = vld [vmem:[%s5489_s0 + $0x12f] sm:$0x2]   ;;  %v2697_v51 = vld [vmem:[%s5489_s0 + $0x1eb] sm:$0x80]   ;;  %v256_v52 = vsel %vm21_vm4, %v2631_v38, %v252_v46  ;;  %v580_v56 = vsel %vm25_vm5, %v2696_v36, %v576_v41 }
  0x23   :  { %v2633_v43 = vld [vmem:[%s5489_s0 + $0x1f3] sm:$0x80]   ;;  %465 = vrot.lane.b32.xlu1 %v464_v28, %s3164_s5  ;;  %v640_v47 = vsel %vm5_vm0, %v2707_v45, %v2706_v44  ;;  %v2708_v48 = vld [vmem:[%s5489_s0 + $0x6e] sm:$0x4]   ;;  %v260_v57 = vsel %vm25_vm5, %v2632_v39, %v256_v52  ;;  %v2714_v59 = vld [vmem:[%s5489_s0 + $0x2f] sm:$0x1]   ;;  %v584_v7 = vsel %vm29_vm6, %v2697_v51, %v580_v56 }
  0x24   :  { %v2709_v49 = vld [vmem:[%s5489_s0 + $0x16d] sm:$0x8]   ;;  %v644_v53 = vsel %vm9_vm1, %v2708_v48, %v640_v47  ;;  %v2715_v60 = vld [vmem:[%s5489_s0 + $0x12e] sm:$0x2]   ;;  %v264_v62 = vsel %vm29_vm6, %v2633_v43, %v260_v57  ;;  %s3165_s26 = smov 116   ;;  %s3166_s2 = smov 102  }
  0x25   :  { %v2710_v50 = vld [vmem:[%s5489_s0 + $0xac] sm:$0x10]   ;;  %v648_v58 = vsel %vm13_vm2, %v2709_v49, %v644_v53  ;;  %v2716_v61 = vld [vmem:[%s5489_s0 + $0x6d] sm:$0x4]   ;;  %v680_v0 = vsel %vm5_vm0, %v2715_v60, %v2714_v59  ;;  %265 = vrot.lane.b32.xlu2 %v264_v62, %s3165_s26  ;;  %v2650_v10 = vld [vmem:[%s5489_s0 + $0x37] sm:$0x1]  }
  0x26   :  { %v2711_v54 = vld [vmem:[%s5489_s0 + $0x1ab] sm:$0x20]   ;;  %v652_v63 = vsel %vm17_vm3, %v2710_v50, %v648_v58  ;;  %v2717_v1 = vld [vmem:[%s5489_s0 + $0x16c] sm:$0x8]   ;;  %v684_v5 = vsel %vm9_vm1, %v2716_v61, %v680_v0  ;;  %v2651_v11 = vld [vmem:[%s5489_s0 + $0x136] sm:$0x2]  }
  0x27   :  { %v2718_v2 = vld [vmem:[%s5489_s0 + $0xab] sm:$0x10]   ;;  %v656_v3 = vsel %vm21_vm4, %v2711_v54, %v652_v63  ;;  %v2712_v4 = vld [vmem:[%s5489_s0 + $0xea] sm:$0x40]   ;;  %v688_v9 = vsel %vm13_vm2, %v2717_v1, %v684_v5  ;;  %v2652_v12 = vld [vmem:[%s5489_s0 + $0x75] sm:$0x4]   ;;  %v360_v15 = vsel %vm5_vm0, %v2651_v11, %v2650_v10 }
  0x28   :  { %v2719_v6 = vld [vmem:[%s5489_s0 + $0x1aa] sm:$0x20]   ;;  %v2713_v8 = vld [vmem:[%s5489_s0 + $0x1e9] sm:$0x80]   ;;  %v692_v13 = vsel %vm17_vm3, %v2718_v2, %v688_v9  ;;  %v2653_v16 = vld [vmem:[%s5489_s0 + $0x174] sm:$0x8]   ;;  %v660_v18 = vsel %vm25_vm5, %v2712_v4, %v656_v3  ;;  %v364_v20 = vsel %vm9_vm1, %v2652_v12, %v360_v15 }
  0x29   :  { %v2720_v14 = vld [vmem:[%s5489_s0 + $0xe9] sm:$0x40]   ;;  %v2654_v17 = vld [vmem:[%s5489_s0 + $0xb3] sm:$0x10]   ;;  %v696_v19 = vsel %vm21_vm4, %v2719_v6, %v692_v13  ;;  %v2730_v23 = vld [vmem:[%s5489_s0 + $0x2d] sm:$0x1]   ;;  %v368_v24 = vsel %vm13_vm2, %v2653_v16, %v364_v20  ;;  %v664_v33 = vsel %vm29_vm6, %v2713_v8, %v660_v18 }
  0x2a   :  { %545 = vrot.lane.b32.xlu0 %v544_v55, %s3166_s2  ;;  %v2655_v21 = vld [vmem:[%s5489_s0 + $0x1b2] sm:$0x20]   ;;  %s3167_s23 = smov 100   ;;  %v2731_v25 = vld [vmem:[%s5489_s0 + $0x12c] sm:$0x2]   ;;  %v372_v29 = vsel %vm17_vm3, %v2654_v17, %v368_v24  ;;  %v700_v34 = vsel %vm25_vm5, %v2720_v14, %v696_v19  ;;  %s3168_s21 = smov 96  }
  0x2b   :  { %v2656_v22 = vld [vmem:[%s5489_s0 + $0xf1] sm:$0x40]   ;;  %585 = vrot.lane.b32.xlu1 %v584_v7, %s3167_s23  ;;  %v2732_v26 = vld [vmem:[%s5489_s0 + $0x6b] sm:$0x4]   ;;  %v2721_v28 = vld [vmem:[%s5489_s0 + $0x1e8] sm:$0x80]   ;;  %v760_v31 = vsel %vm5_vm0, %v2731_v25, %v2730_v23  ;;  %v376_v35 = vsel %vm21_vm4, %v2655_v21, %v372_v29 }
  0x2c   :  { %v2733_v27 = vld [vmem:[%s5489_s0 + $0x16a] sm:$0x8]   ;;  %v2657_v30 = vld [vmem:[%s5489_s0 + $0x1f0] sm:$0x80]   ;;  %v764_v36 = vsel %vm9_vm1, %v2732_v26, %v760_v31  ;;  %v2738_v38 = vld [vmem:[%s5489_s0 + $0x2c] sm:$0x1]   ;;  %v380_v39 = vsel %vm25_vm5, %v2656_v22, %v376_v35  ;;  %v704_v49 = vsel %vm29_vm6, %v2721_v28, %v700_v34 }
  0x2d   :  { %v2734_v32 = vld [vmem:[%s5489_s0 + $0xa9] sm:$0x10]   ;;  %v768_v40 = vsel %vm13_vm2, %v2733_v27, %v764_v36  ;;  %v2739_v41 = vld [vmem:[%s5489_s0 + $0x12b] sm:$0x2]   ;;  %v384_v44 = vsel %vm29_vm6, %v2657_v30, %v380_v39  ;;  %s3169_s22 = smov 110   ;;  %s3170_s12 = smov 94  }
  0x2e   :  { %v2735_v37 = vld [vmem:[%s5489_s0 + $0x1a8] sm:$0x20]   ;;  %v2740_v42 = vld [vmem:[%s5489_s0 + $0x6a] sm:$0x4]   ;;  %v772_v45 = vsel %vm17_vm3, %v2734_v32, %v768_v40  ;;  %v800_v47 = vsel %vm5_vm0, %v2739_v41, %v2738_v38  ;;  %385 = vrot.lane.b32.xlu2 %v384_v44, %s3169_s22  ;;  %v2674_v54 = vld [vmem:[%s5489_s0 + $0x34] sm:$0x1]  }
  0x2f   :  { %v2741_v43 = vld [vmem:[%s5489_s0 + $0x169] sm:$0x8]   ;;  %v2736_v46 = vld [vmem:[%s5489_s0 + $0xe7] sm:$0x40]   ;;  %v776_v50 = vsel %vm21_vm4, %v2735_v37, %v772_v45  ;;  %v804_v52 = vsel %vm9_vm1, %v2740_v42, %v800_v47  ;;  %v2675_v56 = vld [vmem:[%s5489_s0 + $0x133] sm:$0x2]  }
  0x30   :  { %v2742_v48 = vld [vmem:[%s5489_s0 + $0xa8] sm:$0x10]   ;;  %v2737_v51 = vld [vmem:[%s5489_s0 + $0x1e6] sm:$0x80]   ;;  %v808_v55 = vsel %vm13_vm2, %v2741_v43, %v804_v52  ;;  %v2676_v57 = vld [vmem:[%s5489_s0 + $0x72] sm:$0x4]   ;;  %v780_v59 = vsel %vm25_vm5, %v2736_v46, %v776_v50  ;;  %v480_v62 = vsel %vm5_vm0, %v2675_v56, %v2674_v54 }
  0x31   :  { %v2743_v53 = vld [vmem:[%s5489_s0 + $0x1a7] sm:$0x20]   ;;  %v2677_v58 = vld [vmem:[%s5489_s0 + $0x171] sm:$0x8]   ;;  %v812_v60 = vsel %vm17_vm3, %v2742_v48, %v808_v55  ;;  %v484_v3 = vsel %vm9_vm1, %v2676_v57, %v480_v62  ;;  %v2754_v5 = vld [vmem:[%s5489_s0 + $0x2a] sm:$0x1]   ;;  %v784_v12 = vsel %vm29_vm6, %v2737_v51, %v780_v59 }
  0x32   :  { %665 = vrot.lane.b32.xlu0 %v664_v33, %s3168_s21  ;;  %v2744_v61 = vld [vmem:[%s5489_s0 + $0xe6] sm:$0x40]   ;;  %v2678_v63 = vld [vmem:[%s5489_s0 + $0xb0] sm:$0x10]   ;;  %v816_v1 = vsel %vm21_vm4, %v2743_v53, %v812_v60  ;;  %v2755_v6 = vld [vmem:[%s5489_s0 + $0x129] sm:$0x2]   ;;  %v488_v7 = vsel %vm13_vm2, %v2677_v58, %v484_v3 }
  0x33   :  { %v2679_v0 = vld [vmem:[%s5489_s0 + $0x1af] sm:$0x20]   ;;  %705 = vrot.lane.b32.xlu1 %v704_v49, %s3170_s12  ;;  %v2745_v2 = vld [vmem:[%s5489_s0 + $0x1e5] sm:$0x80]   ;;  %v880_v8 = vsel %vm5_vm0, %v2755_v6, %v2754_v5  ;;  %v2756_v9 = vld [vmem:[%s5489_s0 + $0x68] sm:$0x4]   ;;  %v820_v13 = vsel %vm25_vm5, %v2744_v61, %v816_v1  ;;  %v492_v14 = vsel %vm17_vm3, %v2678_v63, %v488_v7 }
  0x34   :  { %v2680_v4 = vld [vmem:[%s5489_s0 + $0xee] sm:$0x40]   ;;  %v2757_v10 = vld [vmem:[%s5489_s0 + $0x167] sm:$0x8]   ;;  %v884_v16 = vsel %vm9_vm1, %v2756_v9, %v880_v8  ;;  %v496_v18 = vsel %vm21_vm4, %v2679_v0, %v492_v14  ;;  %v2762_v20 = vld [vmem:[%s5489_s0 + $0x29] sm:$0x1]   ;;  %v824_v29 = vsel %vm29_vm6, %v2745_v2, %v820_v13 }
  0x35   :  { %v2758_v11 = vld [vmem:[%s5489_s0 + $0xa6] sm:$0x10]   ;;  %v2681_v15 = vld [vmem:[%s5489_s0 + $0x1ed] sm:$0x80]   ;;  %v888_v19 = vsel %vm13_vm2, %v2757_v10, %v884_v16  ;;  %v2763_v21 = vld [vmem:[%s5489_s0 + $0x128] sm:$0x2]   ;;  %v500_v23 = vsel %vm25_vm5, %v2680_v4, %v496_v18 }
  0x36   :  { %v2759_v17 = vld [vmem:[%s5489_s0 + $0x1a5] sm:$0x20]   ;;  %v2764_v22 = vld [vmem:[%s5489_s0 + $0x67] sm:$0x4]   ;;  %v892_v24 = vsel %vm17_vm3, %v2758_v11, %v888_v19  ;;  %v920_v26 = vsel %vm5_vm0, %v2763_v21, %v2762_v20  ;;  %s3171_s14 = smov 90   ;;  %v504_v30 = vsel %vm29_vm6, %v2681_v15, %v500_v23  ;;  %s3172_s19 = smov 104  }
  0x37   :  { %v2760_v25 = vld [vmem:[%s5489_s0 + $0xe4] sm:$0x40]   ;;  %v2765_v27 = vld [vmem:[%s5489_s0 + $0x166] sm:$0x8]   ;;  %v896_v31 = vsel %vm21_vm4, %v2759_v17, %v892_v24  ;;  %v924_v33 = vsel %vm9_vm1, %v2764_v22, %v920_v26  ;;  %505 = vrot.lane.b32.xlu2 %v504_v30, %s3172_s19  ;;  %v2698_v36 = vld [vmem:[%s5489_s0 + $0x31] sm:$0x1]  }
  0x38   :  { %v2766_v28 = vld [vmem:[%s5489_s0 + $0xa5] sm:$0x10]   ;;  %v2761_v32 = vld [vmem:[%s5489_s0 + $0x1e3] sm:$0x80]   ;;  %v928_v35 = vsel %vm13_vm2, %v2765_v27, %v924_v33  ;;  %v2699_v37 = vld [vmem:[%s5489_s0 + $0x130] sm:$0x2]   ;;  %v900_v39 = vsel %vm25_vm5, %v2760_v25, %v896_v31 }
  0x39   :  { %v2767_v34 = vld [vmem:[%s5489_s0 + $0x1a4] sm:$0x20]   ;;  %v2700_v38 = vld [vmem:[%s5489_s0 + $0x6f] sm:$0x4]   ;;  %v932_v40 = vsel %vm17_vm3, %v2766_v28, %v928_v35  ;;  %v600_v42 = vsel %vm5_vm0, %v2699_v37, %v2698_v36  ;;  %s3173_s3 = smov 88   ;;  %v904_v55 = vsel %vm29_vm6, %v2761_v32, %v900_v39  ;;  %s3174_s5 = smov 84  }
  0x3a   :  { %785 = vrot.lane.b32.xlu0 %v784_v12, %s3171_s14  ;;  %v2768_v41 = vld [vmem:[%s5489_s0 + $0xe3] sm:$0x40]   ;;  %v2701_v43 = vld [vmem:[%s5489_s0 + $0x16e] sm:$0x8]   ;;  %v936_v45 = vsel %vm21_vm4, %v2767_v34, %v932_v40  ;;  %v604_v47 = vsel %vm9_vm1, %v2700_v38, %v600_v42  ;;  %v2778_v50 = vld [vmem:[%s5489_s0 + $0x27] sm:$0x1]  }
  0x3b   :  { %v2702_v44 = vld [vmem:[%s5489_s0 + $0xad] sm:$0x10]   ;;  %825 = vrot.lane.b32.xlu1 %v824_v29, %s3173_s3  ;;  %v2769_v46 = vld [vmem:[%s5489_s0 + $0x1e2] sm:$0x80]   ;;  %v608_v51 = vsel %vm13_vm2, %v2701_v43, %v604_v47  ;;  %v2779_v52 = vld [vmem:[%s5489_s0 + $0x126] sm:$0x2]   ;;  %v940_v56 = vsel %vm25_vm5, %v2768_v41, %v936_v45 }
  0x3c   :  { %v2703_v48 = vld [vmem:[%s5489_s0 + $0x1ac] sm:$0x20]   ;;  %v2780_v53 = vld [vmem:[%s5489_s0 + $0x65] sm:$0x4]   ;;  %v612_v57 = vsel %vm17_vm3, %v2702_v44, %v608_v51  ;;  %v1000_v59 = vsel %vm5_vm0, %v2779_v52, %v2778_v50  ;;  %v2786_v1 = vld [vmem:[%s5489_s0 + $0x26] sm:$0x1]   ;;  %v944_v7 = vsel %vm29_vm6, %v2769_v46, %v940_v56 }
  0x3d   :  { %v2704_v49 = vld [vmem:[%s5489_s0 + $0xeb] sm:$0x40]   ;;  %v2781_v54 = vld [vmem:[%s5489_s0 + $0x164] sm:$0x8]   ;;  %v616_v61 = vsel %vm21_vm4, %v2703_v48, %v612_v57  ;;  %v1004_v62 = vsel %vm9_vm1, %v2780_v53, %v1000_v59  ;;  %v2787_v4 = vld [vmem:[%s5489_s0 + $0x125] sm:$0x2]  }
  0x3e   :  { %v2705_v58 = vld [vmem:[%s5489_s0 + $0x1ea] sm:$0x80]   ;;  %v2782_v60 = vld [vmem:[%s5489_s0 + $0xa3] sm:$0x10]   ;;  %v620_v2 = vsel %vm25_vm5, %v2704_v49, %v616_v61  ;;  %v1008_v3 = vsel %vm13_vm2, %v2781_v54, %v1004_v62  ;;  %v2788_v5 = vld [vmem:[%s5489_s0 + $0x64] sm:$0x4]   ;;  %v1040_v11 = vsel %vm5_vm0, %v2787_v4, %v2786_v1 }
  0x3f   :  { %v2783_v63 = vld [vmem:[%s5489_s0 + $0x1a2] sm:$0x20]   ;;  %v2789_v6 = vld [vmem:[%s5489_s0 + $0x163] sm:$0x8]   ;;  %v624_v8 = vsel %vm29_vm6, %v2705_v58, %v620_v2  ;;  %v1012_v9 = vsel %vm17_vm3, %v2782_v60, %v1008_v3  ;;  %s3175_s12 = smov 98   ;;  %v1044_v15 = vsel %vm9_vm1, %v2788_v5, %v1040_v11  ;;  %s3176_s25 = smov 82  }
  0x40   :  { %v2784_v0 = vld [vmem:[%s5489_s0 + $0xe1] sm:$0x40]   ;;  %v2790_v12 = vld [vmem:[%s5489_s0 + $0xa2] sm:$0x10]   ;;  %625 = vrot.lane.b32.xlu2 %v624_v8, %s3175_s12  ;;  %v1016_v14 = vsel %vm21_vm4, %v2783_v63, %v1012_v9  ;;  %v2722_v17 = vld [vmem:[%s5489_s0 + $0x2e] sm:$0x1]   ;;  %v1048_v20 = vsel %vm13_vm2, %v2789_v6, %v1044_v15 }
  0x41   :  { %v2785_v10 = vld [vmem:[%s5489_s0 + $0x1e0] sm:$0x80]   ;;  %v2791_v13 = vld [vmem:[%s5489_s0 + $0x1a1] sm:$0x20]   ;;  %v2723_v18 = vld [vmem:[%s5489_s0 + $0x12d] sm:$0x2]   ;;  %v1020_v19 = vsel %vm25_vm5, %v2784_v0, %v1016_v14  ;;  %v1052_v25 = vsel %vm17_vm3, %v2790_v12, %v1048_v20 }
  0x42   :  { %905 = vrot.lane.b32.xlu0 %v904_v55, %s3174_s5  ;;  %v2792_v16 = vld [vmem:[%s5489_s0 + $0xe0] sm:$0x40]   ;;  %v720_v21 = vsel %vm5_vm0, %v2723_v18, %v2722_v17  ;;  %v2724_v22 = vld [vmem:[%s5489_s0 + $0x6c] sm:$0x4]   ;;  %v1056_v30 = vsel %vm21_vm4, %v2791_v13, %v1052_v25  ;;  %v2802_v33 = vld [vmem:[%s5489_s0 + $0x24] sm:$0x1]   ;;  %v1024_v35 = vsel %vm29_vm6, %v2785_v10, %v1020_v19 }
  0x43   :  { %v2725_v23 = vld [vmem:[%s5489_s0 + $0x16b] sm:$0x8]   ;;  %945 = vrot.lane.b32.xlu1 %v944_v7, %s3176_s25  ;;  %v2793_v26 = vld [vmem:[%s5489_s0 + $0x1df] sm:$0x80]   ;;  %v724_v27 = vsel %vm9_vm1, %v2724_v22, %v720_v21  ;;  %v2803_v34 = vld [vmem:[%s5489_s0 + $0x123] sm:$0x2]   ;;  %v1060_v36 = vsel %vm25_vm5, %v2792_v16, %v1056_v30 }
  0x44   :  { %v2726_v24 = vld [vmem:[%s5489_s0 + $0xaa] sm:$0x10]   ;;  %v728_v31 = vsel %vm13_vm2, %v2725_v23, %v724_v27  ;;  %v1120_v38 = vsel %vm5_vm0, %v2803_v34, %v2802_v33  ;;  %v2804_v39 = vld [vmem:[%s5489_s0 + $0x62] sm:$0x4]   ;;  %v2810_v48 = vld [vmem:[%s5489_s0 + $0x23] sm:$0x1]   ;;  %v1064_v51 = vsel %vm29_vm6, %v2793_v26, %v1060_v36 }
  0x45   :  { %v2727_v28 = vld [vmem:[%s5489_s0 + $0x1a9] sm:$0x20]   ;;  %v732_v37 = vsel %vm17_vm3, %v2726_v24, %v728_v31  ;;  %v2805_v40 = vld [vmem:[%s5489_s0 + $0x161] sm:$0x8]   ;;  %v1124_v43 = vsel %vm9_vm1, %v2804_v39, %v1120_v38  ;;  %v2811_v49 = vld [vmem:[%s5489_s0 + $0x122] sm:$0x2]  }
  0x46   :  { %v2728_v29 = vld [vmem:[%s5489_s0 + $0xe8] sm:$0x40]   ;;  %v2806_v41 = vld [vmem:[%s5489_s0 + $0xa0] sm:$0x10]   ;;  %v736_v42 = vsel %vm21_vm4, %v2727_v28, %v732_v37  ;;  %v1128_v47 = vsel %vm13_vm2, %v2805_v40, %v1124_v43  ;;  %v2812_v50 = vld [vmem:[%s5489_s0 + $0x61] sm:$0x4]   ;;  %v1160_v54 = vsel %vm5_vm0, %v2811_v49, %v2810_v48 }
  0x47   :  { %v2729_v32 = vld [vmem:[%s5489_s0 + $0x1e7] sm:$0x80]   ;;  %v2807_v44 = vld [vmem:[%s5489_s0 + $0x19f] sm:$0x20]   ;;  %v740_v46 = vsel %vm25_vm5, %v2728_v29, %v736_v42  ;;  %s3177_s25 = smov 78   ;;  %v1132_v53 = vsel %vm17_vm3, %v2806_v41, %v1128_v47  ;;  %s3178_s30 = smov 92   ;;  %v1164_v59 = vsel %vm9_vm1, %v2812_v50, %v1160_v54 }
  0x48   :  { %v2808_v45 = vld [vmem:[%s5489_s0 + $0xde] sm:$0x40]   ;;  %v744_v52 = vsel %vm29_vm6, %v2729_v32, %v740_v46  ;;  %v2813_v55 = vld [vmem:[%s5489_s0 + $0x160] sm:$0x8]   ;;  %v1136_v57 = vsel %vm21_vm4, %v2807_v44, %v1132_v53  ;;  %v2746_v0 = vld [vmem:[%s5489_s0 + $0x2b] sm:$0x1]  }
  0x49   :  { %v2814_v56 = vld [vmem:[%s5489_s0 + $0x9f] sm:$0x10]   ;;  %745 = vrot.lane.b32.xlu2 %v744_v52, %s3178_s30  ;;  %v2809_v58 = vld [vmem:[%s5489_s0 + $0x1dd] sm:$0x80]   ;;  %v1140_v62 = vsel %vm25_vm5, %v2808_v45, %v1136_v57  ;;  %v1168_v63 = vsel %vm13_vm2, %v2813_v55, %v1164_v59  ;;  %v2747_v1 = vld [vmem:[%s5489_s0 + $0x12a] sm:$0x2]  }
  0x4a   :  { %1025 = vrot.lane.b32.xlu0 %v1024_v35, %s3177_s25  ;;  %v2815_v60 = vld [vmem:[%s5489_s0 + $0x19e] sm:$0x20]   ;;  %v2748_v2 = vld [vmem:[%s5489_s0 + $0x69] sm:$0x4]   ;;  %s3179_s14 = smov 76   ;;  %v1172_v3 = vsel %vm17_vm3, %v2814_v56, %v1168_v63  ;;  %v840_v5 = vsel %vm5_vm0, %v2747_v1, %v2746_v0  ;;  %v1144_v13 = vsel %vm29_vm6, %v2809_v58, %v1140_v62  ;;  %s3181_s27 = smov 86  }
  0x4b   :  { %v2816_v61 = vld [vmem:[%s5489_s0 + $0xdd] sm:$0x40]   ;;  %1065 = vrot.lane.b32.xlu1 %v1064_v51, %s3179_s14  ;;  %v2749_v6 = vld [vmem:[%s5489_s0 + $0x168] sm:$0x8]   ;;  %v1176_v8 = vsel %vm21_vm4, %v2815_v60, %v1172_v3  ;;  %v844_v9 = vsel %vm9_vm1, %v2748_v2, %v840_v5  ;;  %v2826_v12 = vld [vmem:[%s5489_s0 + $0x21] sm:$0x1]  }
  0x4c   :  { %v2817_v4 = vld [vmem:[%s5489_s0 + $0x1dc] sm:$0x80]   ;;  %v2750_v7 = vld [vmem:[%s5489_s0 + $0xa7] sm:$0x10]   ;;  %v1180_v14 = vsel %vm25_vm5, %v2816_v61, %v1176_v8  ;;  %v848_v15 = vsel %vm13_vm2, %v2749_v6, %v844_v9  ;;  %v2827_v16 = vld [vmem:[%s5489_s0 + $0x120] sm:$0x2]  }
  0x4d   :  { %v2751_v10 = vld [vmem:[%s5489_s0 + $0x1a6] sm:$0x20]   ;;  %v2828_v17 = vld [vmem:[%s5489_s0 + $0x5f] sm:$0x4]   ;;  %v852_v19 = vsel %vm17_vm3, %v2750_v7, %v848_v15  ;;  %v1240_v21 = vsel %vm5_vm0, %v2827_v16, %v2826_v12  ;;  %v2834_v27 = vld [vmem:[%s5489_s0 + $0x20] sm:$0x1]   ;;  %v1184_v28 = vsel %vm29_vm6, %v2817_v4, %v1180_v14 }
  0x4e   :  { %v2752_v11 = vld [vmem:[%s5489_s0 + $0xe5] sm:$0x40]   ;;  %v2829_v18 = vld [vmem:[%s5489_s0 + $0x15e] sm:$0x8]   ;;  %v856_v23 = vsel %vm21_vm4, %v2751_v10, %v852_v19  ;;  %v1244_v24 = vsel %vm9_vm1, %v2828_v17, %v1240_v21  ;;  %s3180_s14 = smov 72   ;;  %s3182_s5 = smov 70  }
  0x4f   :  { %v2753_v20 = vld [vmem:[%s5489_s0 + $0x1e4] sm:$0x80]   ;;  %v2830_v22 = vld [vmem:[%s5489_s0 + $0x9d] sm:$0x10]   ;;  %v860_v29 = vsel %vm25_vm5, %v2752_v11, %v856_v23  ;;  %v1248_v30 = vsel %vm13_vm2, %v2829_v18, %v1244_v24  ;;  %v2835_v32 = vld [vmem:[%s5489_s0 + $0x11f] sm:$0x2]  }
  0x50   :  { %v2831_v25 = vld [vmem:[%s5489_s0 + $0x19c] sm:$0x20]   ;;  %v2836_v33 = vld [vmem:[%s5489_s0 + $0x5e] sm:$0x4]   ;;  %v864_v35 = vsel %vm29_vm6, %v2753_v20, %v860_v29  ;;  %v1252_v36 = vsel %vm17_vm3, %v2830_v22, %v1248_v30  ;;  %v1280_v37 = vsel %vm5_vm0, %v2835_v32, %v2834_v27  ;;  %v2770_v43 = vld [vmem:[%s5489_s0 + $0x28] sm:$0x1]  }
  0x51   :  { %v2832_v26 = vld [vmem:[%s5489_s0 + $0xdb] sm:$0x40]   ;;  %v2837_v34 = vld [vmem:[%s5489_s0 + $0x15d] sm:$0x8]   ;;  %865 = vrot.lane.b32.xlu2 %v864_v35, %s3181_s27  ;;  %v1256_v40 = vsel %vm21_vm4, %v2831_v25, %v1252_v36  ;;  %v1284_v41 = vsel %vm9_vm1, %v2836_v33, %v1280_v37  ;;  %v2771_v44 = vld [vmem:[%s5489_s0 + $0x127] sm:$0x2]  }
  0x52   :  { %1145 = vrot.lane.b32.xlu0 %v1144_v13, %s3180_s14  ;;  %v2833_v31 = vld [vmem:[%s5489_s0 + $0x1da] sm:$0x80]   ;;  %v2838_v38 = vld [vmem:[%s5489_s0 + $0x9c] sm:$0x10]   ;;  %v1260_v45 = vsel %vm25_vm5, %v2832_v26, %v1256_v40  ;;  %v1288_v46 = vsel %vm13_vm2, %v2837_v34, %v1284_v41  ;;  %v960_v47 = vsel %vm5_vm0, %v2771_v44, %v2770_v43  ;;  %v2772_v48 = vld [vmem:[%s5489_s0 + $0x66] sm:$0x4]  }
  0x53   :  { %v2839_v39 = vld [vmem:[%s5489_s0 + $0x19b] sm:$0x20]   ;;  %1185 = vrot.lane.b32.xlu1 %v1184_v28, %s3182_s5  ;;  %v2773_v49 = vld [vmem:[%s5489_s0 + $0x165] sm:$0x8]   ;;  %v1292_v51 = vsel %vm17_vm3, %v2838_v38, %v1288_v46  ;;  %v964_v53 = vsel %vm9_vm1, %v2772_v48, %v960_v47  ;;  %v1264_v56 = vsel %vm29_vm6, %v2833_v31, %v1260_v45  ;;  %v2850_v60 = vld [vmem:[%s5489_s0 + $0x1e] sm:$0x1]  }
  0x54   :  { %v2840_v42 = vld [vmem:[%s5489_s0 + $0xda] sm:$0x40]   ;;  %v2774_v50 = vld [vmem:[%s5489_s0 + $0xa4] sm:$0x10]   ;;  %v1296_v57 = vsel %vm21_vm4, %v2839_v39, %v1292_v51  ;;  %v968_v58 = vsel %vm13_vm2, %v2773_v49, %v964_v53  ;;  %v2851_v61 = vld [vmem:[%s5489_s0 + $0x11d] sm:$0x2]  }
  0x55   :  { %v2841_v52 = vld [vmem:[%s5489_s0 + $0x1d9] sm:$0x80]   ;;  %v2775_v54 = vld [vmem:[%s5489_s0 + $0x1a3] sm:$0x20]   ;;  %v1300_v62 = vsel %vm25_vm5, %v2840_v42, %v1296_v57  ;;  %v972_v63 = vsel %vm17_vm3, %v2774_v50, %v968_v58  ;;  %v1360_v0 = vsel %vm5_vm0, %v2851_v61, %v2850_v60  ;;  %v2852_v1 = vld [vmem:[%s5489_s0 + $0x5c] sm:$0x4]  }
  0x56   :  { %v2776_v55 = vld [vmem:[%s5489_s0 + $0xe2] sm:$0x40]   ;;  %v2853_v2 = vld [vmem:[%s5489_s0 + $0x15b] sm:$0x8]   ;;  %v976_v4 = vsel %vm21_vm4, %v2775_v54, %v972_v63  ;;  %v1364_v5 = vsel %vm9_vm1, %v2852_v1, %v1360_v0  ;;  %s3183_s5 = smov 66   ;;  %v1304_v8 = vsel %vm29_vm6, %v2841_v52, %v1300_v62  ;;  %s3184_s16 = smov 80  }
  0x57   :  { %v2777_v59 = vld [vmem:[%s5489_s0 + $0x1e1] sm:$0x80]   ;;  %v2854_v3 = vld [vmem:[%s5489_s0 + $0x9a] sm:$0x10]   ;;  %v980_v9 = vsel %vm25_vm5, %v2776_v55, %v976_v4  ;;  %v1368_v10 = vsel %vm13_vm2, %v2853_v2, %v1364_v5  ;;  %v2858_v11 = vld [vmem:[%s5489_s0 + $0x1d] sm:$0x1]  }
  0x58   :  { %v2855_v6 = vld [vmem:[%s5489_s0 + $0x199] sm:$0x20]   ;;  %v2859_v12 = vld [vmem:[%s5489_s0 + $0x11c] sm:$0x2]   ;;  %v984_v14 = vsel %vm29_vm6, %v2777_v59, %v980_v9  ;;  %v1372_v15 = vsel %vm17_vm3, %v2854_v3, %v1368_v10  ;;  %s3185_s23 = smov 64   ;;  %s3186_s25 = smov 60  }
  0x59   :  { %v2856_v7 = vld [vmem:[%s5489_s0 + $0xd8] sm:$0x40]   ;;  %v2860_v13 = vld [vmem:[%s5489_s0 + $0x5b] sm:$0x4]   ;;  %v1400_v16 = vsel %vm5_vm0, %v2859_v12, %v2858_v11  ;;  %985 = vrot.lane.b32.xlu2 %v984_v14, %s3184_s16  ;;  %v1376_v19 = vsel %vm21_vm4, %v2855_v6, %v1372_v15  ;;  %v2794_v27 = vld [vmem:[%s5489_s0 + $0x25] sm:$0x1]  }
  0x5a   :  { %1265 = vrot.lane.b32.xlu0 %v1264_v56, %s3183_s5  ;;  %v2861_v17 = vld [vmem:[%s5489_s0 + $0x15a] sm:$0x8]   ;;  %v2857_v20 = vld [vmem:[%s5489_s0 + $0x1d7] sm:$0x80]   ;;  %v1404_v21 = vsel %vm9_vm1, %v2860_v13, %v1400_v16  ;;  %v1380_v24 = vsel %vm25_vm5, %v2856_v7, %v1376_v19  ;;  %v2795_v28 = vld [vmem:[%s5489_s0 + $0x124] sm:$0x2]  }
  0x5b   :  { %v2862_v18 = vld [vmem:[%s5489_s0 + $0x99] sm:$0x10]   ;;  %1305 = vrot.lane.b32.xlu1 %v1304_v8, %s3185_s23  ;;  %v1408_v25 = vsel %vm13_vm2, %v2861_v17, %v1404_v21  ;;  %v2796_v29 = vld [vmem:[%s5489_s0 + $0x63] sm:$0x4]   ;;  %v1080_v31 = vsel %vm5_vm0, %v2795_v28, %v2794_v27  ;;  %v1384_v34 = vsel %vm29_vm6, %v2857_v20, %v1380_v24  ;;  %v2874_v39 = vld [vmem:[%s5489_s0 + $0x1b] sm:$0x1]  }
  0x5c   :  { %v2863_v22 = vld [vmem:[%s5489_s0 + $0x198] sm:$0x20]   ;;  %v1412_v30 = vsel %vm17_vm3, %v2862_v18, %v1408_v25  ;;  %v2797_v32 = vld [vmem:[%s5489_s0 + $0x162] sm:$0x8]   ;;  %v1084_v36 = vsel %vm9_vm1, %v2796_v29, %v1080_v31  ;;  %v2875_v42 = vld [vmem:[%s5489_s0 + $0x11a] sm:$0x2]  }
  0x5d   :  { %v2864_v23 = vld [vmem:[%s5489_s0 + $0xd7] sm:$0x40]   ;;  %v2798_v33 = vld [vmem:[%s5489_s0 + $0xa1] sm:$0x10]   ;;  %v1416_v35 = vsel %vm21_vm4, %v2863_v22, %v1412_v30  ;;  %v1088_v41 = vsel %vm13_vm2, %v2797_v32, %v1084_v36  ;;  %v2876_v43 = vld [vmem:[%s5489_s0 + $0x59] sm:$0x4]   ;;  %v1480_v47 = vsel %vm5_vm0, %v2875_v42, %v2874_v39 }
  0x5e   :  { %v2865_v26 = vld [vmem:[%s5489_s0 + $0x1d6] sm:$0x80]   ;;  %v2799_v37 = vld [vmem:[%s5489_s0 + $0x1a0] sm:$0x20]   ;;  %v1420_v40 = vsel %vm25_vm5, %v2864_v23, %v1416_v35  ;;  %v2877_v44 = vld [vmem:[%s5489_s0 + $0x158] sm:$0x8]   ;;  %v1092_v45 = vsel %vm17_vm3, %v2798_v33, %v1088_v41  ;;  %v1484_v52 = vsel %vm9_vm1, %v2876_v43, %v1480_v47 }
  0x5f   :  { %v2800_v38 = vld [vmem:[%s5489_s0 + $0xdf] sm:$0x40]   ;;  %v2878_v48 = vld [vmem:[%s5489_s0 + $0x97] sm:$0x10]   ;;  %v1424_v50 = vsel %vm29_vm6, %v2865_v26, %v1420_v40  ;;  %v1096_v51 = vsel %vm21_vm4, %v2799_v37, %v1092_v45  ;;  %v2882_v55 = vld [vmem:[%s5489_s0 + $0x1a] sm:$0x1]   ;;  %v1488_v57 = vsel %vm13_vm2, %v2877_v44, %v1484_v52 }
  0x60   :  { %v2801_v46 = vld [vmem:[%s5489_s0 + $0x1de] sm:$0x80]   ;;  %v2879_v49 = vld [vmem:[%s5489_s0 + $0x196] sm:$0x20]   ;;  %v1100_v56 = vsel %vm25_vm5, %v2800_v38, %v1096_v51  ;;  %v2883_v58 = vld [vmem:[%s5489_s0 + $0x119] sm:$0x2]   ;;  %v1492_v62 = vsel %vm17_vm3, %v2878_v48, %v1488_v57 }
  0x61   :  { %v2880_v53 = vld [vmem:[%s5489_s0 + $0xd5] sm:$0x40]   ;;  %v2884_v59 = vld [vmem:[%s5489_s0 + $0x58] sm:$0x4]   ;;  %v1104_v61 = vsel %vm29_vm6, %v2801_v46, %v1100_v56  ;;  %v1520_v63 = vsel %vm5_vm0, %v2883_v58, %v2882_v55  ;;  %s3187_s15 = smov 58   ;;  %s3188_s16 = smov 74   ;;  %v1496_v3 = vsel %vm21_vm4, %v2879_v49, %v1492_v62 }
  0x62   :  { %1385 = vrot.lane.b32.xlu0 %v1384_v34, %s3186_s25  ;;  %v2881_v54 = vld [vmem:[%s5489_s0 + $0x1d4] sm:$0x80]   ;;  %v2885_v60 = vld [vmem:[%s5489_s0 + $0x157] sm:$0x8]   ;;  %1105 = vrot.lane.b32.xlu2 %v1104_v61, %s3188_s16  ;;  %v1524_v4 = vsel %vm9_vm1, %v2884_v59, %v1520_v63  ;;  %v1500_v7 = vsel %vm25_vm5, %v2880_v53, %v1496_v3  ;;  %s3189_s14 = smov 54   ;;  %s3190_s4 = smov 52  }
  0x63   :  { %v2886_v0 = vld [vmem:[%s5489_s0 + $0x96] sm:$0x10]   ;;  %1425 = vrot.lane.b32.xlu1 %v1424_v50, %s3187_s15  ;;  %v2818_v6 = vld [vmem:[%s5489_s0 + $0x22] sm:$0x1]   ;;  %v1528_v8 = vsel %vm13_vm2, %v2885_v60, %v1524_v4  ;;  %v1504_v12 = vsel %vm29_vm6, %v2881_v54, %v1500_v7  ;;  %v2898_v20 = vld [vmem:[%s5489_s0 + $0x18] sm:$0x1]  }
  0x64   :  { %v2887_v1 = vld [vmem:[%s5489_s0 + $0x195] sm:$0x20]   ;;  %v2819_v9 = vld [vmem:[%s5489_s0 + $0x121] sm:$0x2]   ;;  %v1532_v13 = vsel %vm17_vm3, %v2886_v0, %v1528_v8  ;;  %v2899_v21 = vld [vmem:[%s5489_s0 + $0x117] sm:$0x2]  }
  0x65   :  { %v2888_v2 = vld [vmem:[%s5489_s0 + $0xd4] sm:$0x40]   ;;  %v2820_v10 = vld [vmem:[%s5489_s0 + $0x60] sm:$0x4]   ;;  %v1200_v14 = vsel %vm5_vm0, %v2819_v9, %v2818_v6  ;;  %v1536_v17 = vsel %vm21_vm4, %v2887_v1, %v1532_v13  ;;  %v1600_v24 = vsel %vm5_vm0, %v2899_v21, %v2898_v20  ;;  %v2900_v25 = vld [vmem:[%s5489_s0 + $0x56] sm:$0x4]  }
  0x66   :  { %v2889_v5 = vld [vmem:[%s5489_s0 + $0x1d3] sm:$0x80]   ;;  %v2821_v11 = vld [vmem:[%s5489_s0 + $0x15f] sm:$0x8]   ;;  %v1204_v18 = vsel %vm9_vm1, %v2820_v10, %v1200_v14  ;;  %v1540_v22 = vsel %vm25_vm5, %v2888_v2, %v1536_v17  ;;  %v2901_v26 = vld [vmem:[%s5489_s0 + $0x155] sm:$0x8]   ;;  %v1604_v31 = vsel %vm9_vm1, %v2900_v25, %v1600_v24 }
  0x67   :  { %v2822_v15 = vld [vmem:[%s5489_s0 + $0x9e] sm:$0x10]   ;;  %v1208_v23 = vsel %vm13_vm2, %v2821_v11, %v1204_v18  ;;  %v2902_v27 = vld [vmem:[%s5489_s0 + $0x94] sm:$0x10]   ;;  %v1544_v28 = vsel %vm29_vm6, %v2889_v5, %v1540_v22  ;;  %v1608_v35 = vsel %vm13_vm2, %v2901_v26, %v1604_v31  ;;  %v2906_v36 = vld [vmem:[%s5489_s0 + $0x17] sm:$0x1]  }
  0x68   :  { %v2823_v16 = vld [vmem:[%s5489_s0 + $0x19d] sm:$0x20]   ;;  %v1212_v29 = vsel %vm17_vm3, %v2822_v15, %v1208_v23  ;;  %v2903_v32 = vld [vmem:[%s5489_s0 + $0x193] sm:$0x20]   ;;  %v2907_v37 = vld [vmem:[%s5489_s0 + $0x116] sm:$0x2]   ;;  %v1612_v40 = vsel %vm17_vm3, %v2902_v27, %v1608_v35 }
  0x69   :  { %v2824_v19 = vld [vmem:[%s5489_s0 + $0xdc] sm:$0x40]   ;;  %v2904_v33 = vld [vmem:[%s5489_s0 + $0xd2] sm:$0x40]   ;;  %v1216_v34 = vsel %vm21_vm4, %v2823_v16, %v1212_v29  ;;  %v2908_v38 = vld [vmem:[%s5489_s0 + $0x55] sm:$0x4]   ;;  %v1640_v42 = vsel %vm5_vm0, %v2907_v37, %v2906_v36  ;;  %v1616_v46 = vsel %vm21_vm4, %v2903_v32, %v1612_v40 }
  0x6a   :  { %1505 = vrot.lane.b32.xlu0 %v1504_v12, %s3189_s14  ;;  %v2825_v30 = vld [vmem:[%s5489_s0 + $0x1db] sm:$0x80]   ;;  %v1220_v39 = vsel %vm25_vm5, %v2824_v19, %v1216_v34  ;;  %v2905_v41 = vld [vmem:[%s5489_s0 + $0x1d1] sm:$0x80]   ;;  %v2909_v43 = vld [vmem:[%s5489_s0 + $0x154] sm:$0x8]   ;;  %v1644_v47 = vsel %vm9_vm1, %v2908_v38, %v1640_v42  ;;  %v1620_v51 = vsel %vm25_vm5, %v2904_v33, %v1616_v46 }
  0x6b   :  { %v2910_v44 = vld [vmem:[%s5489_s0 + $0x93] sm:$0x10]   ;;  %1545 = vrot.lane.b32.xlu1 %v1544_v28, %s3190_s4  ;;  %v1224_v45 = vsel %vm29_vm6, %v2825_v30, %v1220_v39  ;;  %s3191_s11 = smov 68   ;;  %v1648_v52 = vsel %vm13_vm2, %v2909_v43, %v1644_v47  ;;  %v2842_v53 = vld [vmem:[%s5489_s0 + $0x1f] sm:$0x1]   ;;  %v1624_v56 = vsel %vm29_vm6, %v2905_v41, %v1620_v51  ;;  %s3192_s5 = smov 48  }
  0x6c   :  { %v2911_v48 = vld [vmem:[%s5489_s0 + $0x192] sm:$0x20]   ;;  %1225 = vrot.lane.b32.xlu2 %v1224_v45, %s3191_s11  ;;  %v2843_v54 = vld [vmem:[%s5489_s0 + $0x11e] sm:$0x2]   ;;  %v1652_v57 = vsel %vm17_vm3, %v2910_v44, %v1648_v52  ;;  %v2922_v1 = vld [vmem:[%s5489_s0 + $0x15] sm:$0x1]  }
  0x6d   :  { %v2912_v49 = vld [vmem:[%s5489_s0 + $0xd1] sm:$0x40]   ;;  %v2844_v55 = vld [vmem:[%s5489_s0 + $0x5d] sm:$0x4]   ;;  %v1320_v58 = vsel %vm5_vm0, %v2843_v54, %v2842_v53  ;;  %v1656_v61 = vsel %vm21_vm4, %v2911_v48, %v1652_v57  ;;  %v2923_v4 = vld [vmem:[%s5489_s0 + $0x114] sm:$0x2]  }
  0x6e   :  { %v2913_v50 = vld [vmem:[%s5489_s0 + $0x1d0] sm:$0x80]   ;;  %v2845_v59 = vld [vmem:[%s5489_s0 + $0x15c] sm:$0x8]   ;;  %v1324_v62 = vsel %vm9_vm1, %v2844_v55, %v1320_v58  ;;  %v1660_v2 = vsel %vm25_vm5, %v2912_v49, %v1656_v61  ;;  %v2924_v5 = vld [vmem:[%s5489_s0 + $0x53] sm:$0x4]   ;;  %v1720_v10 = vsel %vm5_vm0, %v2923_v4, %v2922_v1 }
  0x6f   :  { %v2846_v60 = vld [vmem:[%s5489_s0 + $0x9b] sm:$0x10]   ;;  %v1328_v3 = vsel %vm13_vm2, %v2845_v59, %v1324_v62  ;;  %v2925_v6 = vld [vmem:[%s5489_s0 + $0x152] sm:$0x8]   ;;  %v1664_v7 = vsel %vm29_vm6, %v2913_v50, %v1660_v2  ;;  %v1724_v14 = vsel %vm9_vm1, %v2924_v5, %v1720_v10  ;;  %v2930_v17 = vld [vmem:[%s5489_s0 + $0x14] sm:$0x1]  }
  0x70   :  { %v2847_v63 = vld [vmem:[%s5489_s0 + $0x19a] sm:$0x20]   ;;  %v1332_v8 = vsel %vm17_vm3, %v2846_v60, %v1328_v3  ;;  %v2926_v11 = vld [vmem:[%s5489_s0 + $0x91] sm:$0x10]   ;;  %v1728_v19 = vsel %vm13_vm2, %v2925_v6, %v1724_v14  ;;  %v2931_v20 = vld [vmem:[%s5489_s0 + $0x113] sm:$0x2]  }
  0x71   :  { %v2848_v0 = vld [vmem:[%s5489_s0 + $0xd9] sm:$0x40]   ;;  %v2927_v12 = vld [vmem:[%s5489_s0 + $0x190] sm:$0x20]   ;;  %v1336_v13 = vsel %vm21_vm4, %v2847_v63, %v1332_v8  ;;  %v2932_v21 = vld [vmem:[%s5489_s0 + $0x52] sm:$0x4]   ;;  %v1732_v24 = vsel %vm17_vm3, %v2926_v11, %v1728_v19  ;;  %v1760_v25 = vsel %vm5_vm0, %v2931_v20, %v2930_v17 }
  0x72   :  { %1625 = vrot.lane.b32.xlu0 %v1624_v56, %s3192_s5  ;;  %v2849_v9 = vld [vmem:[%s5489_s0 + $0x1d8] sm:$0x80]   ;;  %v2928_v15 = vld [vmem:[%s5489_s0 + $0xcf] sm:$0x40]   ;;  %v1340_v18 = vsel %vm25_vm5, %v2848_v0, %v1336_v13  ;;  %v2933_v22 = vld [vmem:[%s5489_s0 + $0x151] sm:$0x8]   ;;  %v1736_v28 = vsel %vm21_vm4, %v2927_v12, %v1732_v24  ;;  %v1764_v29 = vsel %vm9_vm1, %v2932_v21, %v1760_v25 }
  0x73   :  { %v2929_v16 = vld [vmem:[%s5489_s0 + $0x1ce] sm:$0x80]   ;;  %s3193_s24 = smov 46   ;;  %v1344_v23 = vsel %vm29_vm6, %v2849_v9, %v1340_v18  ;;  %v2934_v26 = vld [vmem:[%s5489_s0 + $0x90] sm:$0x10]   ;;  %s3194_s29 = smov 62   ;;  %v1740_v33 = vsel %vm25_vm5, %v2928_v15, %v1736_v28  ;;  %v1768_v34 = vsel %vm13_vm2, %v2933_v22, %v1764_v29 }
  0x74   :  { %1665 = vrot.lane.b32.xlu1 %v1664_v7, %s3193_s24  ;;  %v2935_v27 = vld [vmem:[%s5489_s0 + $0x18f] sm:$0x20]   ;;  %1345 = vrot.lane.b32.xlu2 %v1344_v23, %s3194_s29  ;;  %v2866_v31 = vld [vmem:[%s5489_s0 + $0x1c] sm:$0x1]   ;;  %v1744_v39 = vsel %vm29_vm6, %v2929_v16, %v1740_v33  ;;  %v1772_v40 = vsel %vm17_vm3, %v2934_v26, %v1768_v34  ;;  %s3195_s19 = smov 42   ;;  %vm31_vm7 = vcmask 15360  }
  0x75   :  { %v2936_v30 = vld [vmem:[%s5489_s0 + $0xce] sm:$0x40]   ;;  %v2867_v32 = vld [vmem:[%s5489_s0 + $0x11b] sm:$0x2]   ;;  %v1776_v44 = vsel %vm21_vm4, %v2935_v27, %v1772_v40  ;;  %v2580_v50 = vld [vmem:[%s5489_s0 + $0x7e] sm:$0x4]  }
  0x76   :  { %v1440_v35 = vsel %vm5_vm0, %v2867_v32, %v2866_v31  ;;  %v2868_v36 = vld [vmem:[%s5489_s0 + $0x5a] sm:$0x4]   ;;  %v2937_v41 = vld [vmem:[%s5489_s0 + $0x1cd] sm:$0x80]   ;;  %v1780_v47 = vsel %vm25_vm5, %v2936_v30, %v1776_v44  ;;  %v2581_v51 = vld [vmem:[%s5489_s0 + $0xbd] sm:$0x8]   ;;  %v4541_v56 = vpop.permute.xlu2 %225  }
  0x77   :  { %v2869_v37 = vld [vmem:[%s5489_s0 + $0x159] sm:$0x8]   ;;  %v1444_v42 = vsel %vm9_vm1, %v2868_v36, %v1440_v35  ;;  %v1784_v52 = vsel %vm29_vm6, %v2937_v41, %v1780_v47  ;;  %v2582_v54 = vld [vmem:[%s5489_s0 + $0xfc] sm:$0x10]   ;;  %v2946_v61 = vld [vmem:[%s5489_s0 + $0x12] sm:$0x1]  }
  0x78   :  { %v2870_v38 = vld [vmem:[%s5489_s0 + $0x98] sm:$0x10]   ;;  %v1448_v45 = vsel %vm13_vm2, %v2869_v37, %v1444_v42  ;;  %v2_v55 = vld [vmem:[%s5489_s0] sm:$0x1]   ;;  %s3196_s7 = smov 40   ;;  %s3197_s16 = smov 56  }
  0x79   :  { %v2871_v43 = vld [vmem:[%s5489_s0 + $0x197] sm:$0x20]   ;;  %v1452_v48 = vsel %vm17_vm3, %v2870_v38, %v1448_v45  ;;  %v2583_v58 = vld [vmem:[%s5489_s0 + $0x13b] sm:$0x20]   ;;  %v2947_v1 = vld [vmem:[%s5489_s0 + $0x111] sm:$0x2]  }
  0x7a   :  { %v2872_v46 = vld [vmem:[%s5489_s0 + $0xd6] sm:$0x40]   ;;  %1745 = vrot.lane.b32.xlu0 %v1744_v39, %s3195_s19  ;;  %v1456_v53 = vsel %vm21_vm4, %v2871_v43, %v1452_v48  ;;  %v2579_v60 = vld [vmem:[%s5489_s0 + $0x3f] sm:$0x2]   ;;  %v2948_v2 = vld [vmem:[%s5489_s0 + $0x50] sm:$0x4]   ;;  %v1840_v6 = vsel %vm5_vm0, %v2947_v1, %v2946_v61 }
  0x7b   :  { %v2873_v49 = vld [vmem:[%s5489_s0 + $0x1d5] sm:$0x80]   ;;  %v1460_v57 = vsel %vm25_vm5, %v2872_v46, %v1456_v53  ;;  %v2584_v63 = vld [vmem:[%s5489_s0 + $0x17a] sm:$0x40]   ;;  %v6_v0 = vsel %vm5_vm0, %v2579_v60, %v2_v55  ;;  %v2949_v3 = vld [vmem:[%s5489_s0 + $0x14f] sm:$0x8]   ;;  %v1844_v11 = vsel %vm9_vm1, %v2948_v2, %v1840_v6 }
  0x7c   :  { %v4547_v59 = vpop.permute.xlu0 %65   ;;  %1785 = vrot.lane.b32.xlu1 %v1784_v52, %s3196_s7  ;;  %v1464_v62 = vsel %vm29_vm6, %v2873_v49, %v1460_v57  ;;  %v2585_v4 = vld [vmem:[%s5489_s0 + $0x1b9] sm:$0x80]   ;;  %vm67_vm8 = vcmask 1048560   ;;  %v10_v5 = vsel %vm9_vm1, %v2580_v50, %v6_v0  ;;  %v2950_v7 = vld [vmem:[%s5489_s0 + $0x8e] sm:$0x10]   ;;  %v1848_v16 = vsel %vm13_vm2, %v2949_v3, %v1844_v11  ;;  %s3198_s26 = smov 36  }
  0x7d   :  { %1465 = vrot.lane.b32.xlu2 %v1464_v62, %s3197_s16  ;;  %v2951_v8 = vld [vmem:[%s5489_s0 + $0x18d] sm:$0x20]   ;;  %v14_v9 = vsel %vm13_vm2, %v2581_v51, %v10_v5  ;;  %v4581_v10 = vpop.permute.xlu1 %145   ;;  %v2954_v13 = vld [vmem:[%s5489_s0 + $0x11] sm:$0x1]   ;;  %v1852_v22 = vsel %vm17_vm3, %v2950_v7, %v1848_v16  ;;  %v2890_v31 = vld [vmem:[%s5489_s0 + $0x19] sm:$0x1]  }
  0x7e   :  { %v2952_v12 = vld [vmem:[%s5489_s0 + $0xcc] sm:$0x40]   ;;  %v2955_v14 = vld [vmem:[%s5489_s0 + $0x110] sm:$0x2]   ;;  %v18_v15 = vsel %vm17_vm3, %v2582_v54, %v14_v9  ;;  %v1856_v28 = vsel %vm21_vm4, %v2951_v8, %v1852_v22  ;;  %v2891_v32 = vld [vmem:[%s5489_s0 + $0x118] sm:$0x2]  }
  0x7f   :  { %v1880_v17 = vsel %vm5_vm0, %v2955_v14, %v2954_v13  ;;  %v2956_v18 = vld [vmem:[%s5489_s0 + $0x4f] sm:$0x4]   ;;  %v22_v21 = vsel %vm21_vm4, %v2583_v58, %v18_v15  ;;  %v2953_v23 = vld [vmem:[%s5489_s0 + $0x1cb] sm:$0x80]   ;;  %vm147_vm9 = vcmask 1015760   ;;  %v1860_v34 = vsel %vm25_vm5, %v2952_v12, %v1856_v28  ;;  %v4642_v40 = vpop.permute.xlu2 %265   ;;  %s3199_s2 = smov 34  }
  0x80   :  { %v2957_v19 = vld [vmem:[%s5489_s0 + $0x14e] sm:$0x8]   ;;  %v1884_v24 = vsel %vm9_vm1, %v2956_v18, %v1880_v17  ;;  %v26_v27 = vsel %vm25_vm5, %v2584_v63, %v22_v21  ;;  %v1560_v36 = vsel %vm5_vm0, %v2891_v32, %v2890_v31  ;;  %v2892_v37 = vld [vmem:[%s5489_s0 + $0x57] sm:$0x4]   ;;  %v1864_v41 = vsel %vm29_vm6, %v2953_v23, %v1860_v34  ;;  %v2970_v54 = vld [vmem:[%s5489_s0 + $0xf] sm:$0x1]  }
  0x81   :  { %v2958_v20 = vld [vmem:[%s5489_s0 + $0x8d] sm:$0x10]   ;;  %v1888_v29 = vsel %vm13_vm2, %v2957_v19, %v1884_v24  ;;  %v30_v33 = vsel %vm29_vm6, %v2585_v4, %v26_v27  ;;  %v2893_v38 = vld [vmem:[%s5489_s0 + $0x156] sm:$0x8]   ;;  %v1564_v43 = vsel %vm9_vm1, %v2892_v37, %v1560_v36  ;;  %vm107_vm10 = vcmask 1032160   ;;  %s3200_s15 = smov 50  }
  0x82   :  { %v2959_v25 = vld [vmem:[%s5489_s0 + $0x18c] sm:$0x20]   ;;  %v1892_v35 = vsel %vm17_vm3, %v2958_v20, %v1888_v29  ;;  %v2894_v39 = vld [vmem:[%s5489_s0 + $0x95] sm:$0x10]   ;;  %1865 = vrot.lane.b32.xlu0 %v1864_v41, %s3198_s26  ;;  %v1568_v47 = vsel %vm13_vm2, %v2893_v38, %v1564_v43  ;;  %v2971_v55 = vld [vmem:[%s5489_s0 + $0x10e] sm:$0x2]  }
  0x83   :  { %v2960_v26 = vld [vmem:[%s5489_s0 + $0xcb] sm:$0x40]   ;;  %32 = vst.msk [vmem:[#allocation0] ss:$8 sm:$0xf] %vm31_vm7, %v30_v33   ;;  %v1896_v42 = vsel %vm21_vm4, %v2959_v25, %v1892_v35  ;;  %v1572_v50 = vsel %vm17_vm3, %v2894_v39, %v1568_v47  ;;  %v1960_v58 = vsel %vm5_vm0, %v2971_v55, %v2970_v54  ;;  %vm227_vm11 = vcmask 982960  }
  0x84   :  { %v2961_v30 = vld [vmem:[%s5489_s0 + $0x1ca] sm:$0x80]   ;;  %v2895_v44 = vld [vmem:[%s5489_s0 + $0x194] sm:$0x20]   ;;  %v106_v45 = vpop.permute.xlu0 %105   ;;  %v1900_v46 = vsel %vm25_vm5, %v2960_v26, %v1896_v42  ;;  %v2972_v60 = vld [vmem:[%s5489_s0 + $0x4d] sm:$0x4]  }
  0x85   :  { %34 = vst.msk [vmem:[#allocation0 - $0x1f] ss:$8 sm:$0xf0] %vm31_vm7, %v30_v33   ;;  %v2896_v48 = vld [vmem:[%s5489_s0 + $0xd3] sm:$0x40]   ;;  %v1904_v49 = vsel %vm29_vm6, %v2961_v30, %v1900_v46  ;;  %v1576_v52 = vsel %vm21_vm4, %v2895_v44, %v1572_v50  ;;  %v4667_v53 = vpop.permute.xlu1 %185   ;;  %v1964_v62 = vsel %vm9_vm1, %v2972_v60, %v1960_v58  ;;  %vm187_vm12 = vcmask 999360  }
  0x86   :  { %68 = vst.msk [vmem:[#allocation0] sm:$0x3] %vm67_vm8, %v4547_v59   ;;  %v2897_v51 = vld [vmem:[%s5489_s0 + $0x1d2] sm:$0x80]   ;;  %1905 = vrot.lane.b32.xlu1 %v1904_v49, %s3199_s2  ;;  %v1580_v57 = vsel %vm25_vm5, %v2896_v48, %v1576_v52  ;;  %v2973_v61 = vld [vmem:[%s5489_s0 + $0x14c] sm:$0x8]  }
  0x87   :  { %70 = vst.msk [vmem:[#allocation0 + $0x6] sm:$0xc] %vm67_vm8, %v4547_v59   ;;  %v2974_v63 = vld [vmem:[%s5489_s0 + $0x8b] sm:$0x10]   ;;  %v1968_v1 = vsel %vm13_vm2, %v2973_v61, %v1964_v62  ;;  %v2978_v5 = vld [vmem:[%s5489_s0 + $0xe] sm:$0x1]  }
  0x88   :  { %72 = vst.msk [vmem:[#allocation0 + $0xc] sm:$0x30] %vm67_vm8, %v4547_v59   ;;  %v2975_v0 = vld [vmem:[%s5489_s0 + $0x18a] sm:$0x20]   ;;  %v1972_v4 = vsel %vm17_vm3, %v2974_v63, %v1968_v1  ;;  %v2979_v6 = vld [vmem:[%s5489_s0 + $0x10d] sm:$0x2]   ;;  %v4722_v13 = vpop.permute.xlu2 %385  }
  0x89   :  { %74 = vst.msk [vmem:[#allocation0 + $0x12] sm:$0xc0] %vm67_vm8, %v4547_v59   ;;  %v1584_v59 = vsel %vm29_vm6, %v2897_v51, %v1580_v57  ;;  %v2976_v2 = vld [vmem:[%s5489_s0 + $0xc9] sm:$0x40]   ;;  %v1976_v7 = vsel %vm21_vm4, %v2975_v0, %v1972_v4  ;;  %v2000_v8 = vsel %vm5_vm0, %v2979_v6, %v2978_v5  ;;  %v2980_v9 = vld [vmem:[%s5489_s0 + $0x4c] sm:$0x4]  }
  0x8a   :  { %1585 = vrot.lane.b32.xlu2 %v1584_v59, %s3200_s15  ;;  %108 = vst.msk [vmem:[#allocation0] sm:$0x3] %vm107_vm10, %v106_v45   ;;  %v2977_v3 = vld [vmem:[%s5489_s0 + $0x1c8] sm:$0x80]   ;;  %v2981_v11 = vld [vmem:[%s5489_s0 + $0x14b] sm:$0x8]   ;;  %v1980_v14 = vsel %vm25_vm5, %v2976_v2, %v1976_v7  ;;  %v2004_v15 = vsel %vm9_vm1, %v2980_v9, %v2000_v8 }
  0x8b   :  { %110 = vst.msk [vmem:[#allocation0 + $0x6] sm:$0xc] %vm107_vm10, %v106_v45   ;;  %v2982_v16 = vld [vmem:[%s5489_s0 + $0x8a] sm:$0x10]   ;;  %v1984_v18 = vsel %vm29_vm6, %v2977_v3, %v1980_v14  ;;  %v2008_v19 = vsel %vm13_vm2, %v2981_v11, %v2004_v15  ;;  %s3201_s7 = smov 30   ;;  %vm267_vm13 = vcmask 966560  }
  0x8c   :  { %112 = vst.msk [vmem:[#allocation0 + $0xc] sm:$0x30] %vm107_vm10, %v106_v45   ;;  %v4720_v12 = vpop.permute.xlu0 %305   ;;  %v2983_v17 = vld [vmem:[%s5489_s0 + $0x189] sm:$0x20]   ;;  %1985 = vrot.lane.b32.xlu0 %v1984_v18, %s3201_s7  ;;  %v2012_v22 = vsel %vm17_vm3, %v2982_v16, %v2008_v19  ;;  %v2914_v23 = vld [vmem:[%s5489_s0 + $0x16] sm:$0x1]  }
  0x8d   :  { %114 = vst.msk [vmem:[#allocation0 + $0x12] sm:$0xc0] %vm107_vm10, %v106_v45   ;;  %v2984_v20 = vld [vmem:[%s5489_s0 + $0xc8] sm:$0x40]   ;;  %v4749_v24 = vpop.permute.xlu1 %345   ;;  %v2016_v25 = vsel %vm21_vm4, %v2983_v17, %v2012_v22  ;;  %v2915_v26 = vld [vmem:[%s5489_s0 + $0x115] sm:$0x2]  }
  0x8e   :  { %148 = vst.msk [vmem:[#allocation0] sm:$0x3] %vm147_vm9, %v4581_v10   ;;  %v2985_v21 = vld [vmem:[%s5489_s0 + $0x1c7] sm:$0x80]   ;;  %v2916_v27 = vld [vmem:[%s5489_s0 + $0x54] sm:$0x4]   ;;  %v1680_v28 = vsel %vm5_vm0, %v2915_v26, %v2914_v23 }
  0x8f   :  { %150 = vst.msk [vmem:[#allocation0 + $0x6] sm:$0xc] %vm147_vm9, %v4581_v10   ;;  %v2917_v29 = vld [vmem:[%s5489_s0 + $0x153] sm:$0x8]   ;;  %v1684_v32 = vsel %vm9_vm1, %v2916_v27, %v1680_v28  ;;  %s3202_s20 = smov 28   ;;  %vm307_vm14 = vcmask 950160  }
  0x90   :  { %152 = vst.msk [vmem:[#allocation0 + $0xc] sm:$0x30] %vm147_vm9, %v4581_v10   ;;  %v2918_v30 = vld [vmem:[%s5489_s0 + $0x92] sm:$0x10]   ;;  %v1688_v34 = vsel %vm13_vm2, %v2917_v29, %v1684_v32  ;;  %v2994_v38 = vld [vmem:[%s5489_s0 + $0xc] sm:$0x1]  }
  0x91   :  { %154 = vst.msk [vmem:[#allocation0 + $0x12] sm:$0xc0] %vm147_vm9, %v4581_v10   ;;  %v2020_v10 = vsel %vm25_vm5, %v2984_v20, %v2016_v25  ;;  %v2919_v33 = vld [vmem:[%s5489_s0 + $0x191] sm:$0x20]   ;;  %v1692_v37 = vsel %vm17_vm3, %v2918_v30, %v1688_v34  ;;  %v2995_v42 = vld [vmem:[%s5489_s0 + $0x10b] sm:$0x2]   ;;  %v4803_v44 = vpop.permute.xlu2 %505  }
  0x92   :  { %188 = vst.msk [vmem:[#allocation0] sm:$0x3] %vm187_vm12, %v4667_v53   ;;  %v2024_v31 = vsel %vm29_vm6, %v2985_v21, %v2020_v10  ;;  %v2920_v35 = vld [vmem:[%s5489_s0 + $0xd0] sm:$0x40]   ;;  %v1696_v41 = vsel %vm21_vm4, %v2919_v33, %v1692_v37  ;;  %v2996_v43 = vld [vmem:[%s5489_s0 + $0x4a] sm:$0x4]   ;;  %v2080_v46 = vsel %vm5_vm0, %v2995_v42, %v2994_v38 }
  0x93   :  { %190 = vst.msk [vmem:[#allocation0 + $0x6] sm:$0xc] %vm187_vm12, %v4667_v53   ;;  %2025 = vrot.lane.b32.xlu1 %v2024_v31, %s3202_s20  ;;  %v2921_v36 = vld [vmem:[%s5489_s0 + $0x1cf] sm:$0x80]   ;;  %v1700_v45 = vsel %vm25_vm5, %v2920_v35, %v1696_v41  ;;  %v2997_v47 = vld [vmem:[%s5489_s0 + $0x149] sm:$0x8]   ;;  %v2084_v50 = vsel %vm9_vm1, %v2996_v43, %v2080_v46 }
  0x94   :  { %192 = vst.msk [vmem:[#allocation0 + $0xc] sm:$0x30] %vm187_vm12, %v4667_v53   ;;  %v4792_v39 = vpop.permute.xlu0 %425   ;;  %v2998_v48 = vld [vmem:[%s5489_s0 + $0x88] sm:$0x10]   ;;  %v1704_v49 = vsel %vm29_vm6, %v2921_v36, %v1700_v45  ;;  %s3203_s10 = smov 44   ;;  %v2088_v54 = vsel %vm13_vm2, %v2997_v47, %v2084_v50  ;;  %vm347_vm15 = vcmask 933760  }
  0x95   :  { %194 = vst.msk [vmem:[#allocation0 + $0x12] sm:$0xc0] %vm187_vm12, %v4667_v53   ;;  %v2999_v51 = vld [vmem:[%s5489_s0 + $0x187] sm:$0x20]   ;;  %v4825_v53 = vpop.permute.xlu1 %465   ;;  %1705 = vrot.lane.b32.xlu2 %v1704_v49, %s3203_s10  ;;  %v3002_v57 = vld [vmem:[%s5489_s0 + $0xb] sm:$0x1]  }
  0x96   :  { %228 = vst.msk [vmem:[#allocation0] sm:$0x3] %vm227_vm11, %v4541_v56   ;;  %v3000_v52 = vld [vmem:[%s5489_s0 + $0xc6] sm:$0x40]   ;;  %v3003_v58 = vld [vmem:[%s5489_s0 + $0x10a] sm:$0x2]  }
  0x97   :  { %230 = vst.msk [vmem:[#allocation0 + $0x6] sm:$0xc] %vm227_vm11, %v4541_v56   ;;  %v3001_v55 = vld [vmem:[%s5489_s0 + $0x1c5] sm:$0x80]   ;;  %v3004_v60 = vld [vmem:[%s5489_s0 + $0x49] sm:$0x4]   ;;  %v2120_v59 = vsel %vm5_vm0, %v3003_v58, %v3002_v57 }
  0x98   :  { %232 = vst.msk [vmem:[#allocation0 + $0xc] sm:$0x30] %vm227_vm11, %v4541_v56   ;;  %v3005_v62 = vld [vmem:[%s5489_s0 + $0x148] sm:$0x8]   ;;  %v2124_v1 = vsel %vm9_vm1, %v3004_v60, %v2120_v59  ;;  %s3204_s29 = smov 24   ;;  %vm387_vm7 = vcmask 917360  }
  0x99   :  { %234 = vst.msk [vmem:[#allocation0 + $0x12] sm:$0xc0] %vm227_vm11, %v4541_v56   ;;  %v2092_v56 = vsel %vm17_vm3, %v2998_v48, %v2088_v54  ;;  %v3006_v63 = vld [vmem:[%s5489_s0 + $0x87] sm:$0x10]   ;;  %v2128_v5 = vsel %vm13_vm2, %v3005_v62, %v2124_v1  ;;  %v2938_v8 = vld [vmem:[%s5489_s0 + $0x13] sm:$0x1]  }
  0x9a   :  { %268 = vst.msk [vmem:[#allocation0] sm:$0x3] %vm267_vm13, %v4642_v40   ;;  %v2096_v61 = vsel %vm21_vm4, %v2999_v51, %v2092_v56  ;;  %v3007_v2 = vld [vmem:[%s5489_s0 + $0x186] sm:$0x20]   ;;  %v2939_v9 = vld [vmem:[%s5489_s0 + $0x112] sm:$0x2]   ;;  %v4883_v11 = vpop.permute.xlu2 %625  }
  0x9b   :  { %270 = vst.msk [vmem:[#allocation0 + $0x6] sm:$0xc] %vm267_vm13, %v4642_v40   ;;  %v2100_v0 = vsel %vm25_vm5, %v3000_v52, %v2096_v61  ;;  %v3008_v3 = vld [vmem:[%s5489_s0 + $0xc5] sm:$0x40]   ;;  %v1800_v15 = vsel %vm5_vm0, %v2939_v9, %v2938_v8  ;;  %v2940_v16 = vld [vmem:[%s5489_s0 + $0x51] sm:$0x4]  }
  0x9c   :  { %272 = vst.msk [vmem:[#allocation0 + $0xc] sm:$0x30] %vm267_vm13, %v4642_v40   ;;  %v2104_v4 = vsel %vm29_vm6, %v3001_v55, %v2100_v0  ;;  %v3009_v6 = vld [vmem:[%s5489_s0 + $0x1c4] sm:$0x80]   ;;  %v4872_v7 = vpop.permute.xlu0 %545   ;;  %v2941_v17 = vld [vmem:[%s5489_s0 + $0x150] sm:$0x8]   ;;  %v1804_v19 = vsel %vm9_vm1, %v2940_v16, %v1800_v15 }
  0x9d   :  { %274 = vst.msk [vmem:[#allocation0 + $0x12] sm:$0xc0] %vm267_vm13, %v4642_v40   ;;  %2105 = vrot.lane.b32.xlu0 %v2104_v4, %s3204_s29  ;;  %v2132_v40 = vsel %vm17_vm3, %v3006_v63, %v2128_v5  ;;  %v2942_v20 = vld [vmem:[%s5489_s0 + $0x8f] sm:$0x10]   ;;  %v4905_v22 = vpop.permute.xlu1 %585   ;;  %v1808_v25 = vsel %vm13_vm2, %v2941_v17, %v1804_v19  ;;  %s3205_s15 = smov 22   ;;  %vm427_vm8 = vcmask 900960  }
  0x9e   :  { %308 = vst.msk [vmem:[#allocation0] sm:$0x3] %vm307_vm14, %v4720_v12   ;;  %v2136_v14 = vsel %vm21_vm4, %v3007_v2, %v2132_v40  ;;  %v2943_v21 = vld [vmem:[%s5489_s0 + $0x18e] sm:$0x20]   ;;  %v3018_v28 = vld [vmem:[%s5489_s0 + $0x9] sm:$0x1]  }
  0x9f   :  { %310 = vst.msk [vmem:[#allocation0 + $0x6] sm:$0xc] %vm307_vm14, %v4720_v12   ;;  %v2140_v18 = vsel %vm25_vm5, %v3008_v3, %v2136_v14  ;;  %v2944_v26 = vld [vmem:[%s5489_s0 + $0xcd] sm:$0x40]   ;;  %v3019_v29 = vld [vmem:[%s5489_s0 + $0x108] sm:$0x2]  }
  0xa0   :  { %312 = vst.msk [vmem:[#allocation0 + $0xc] sm:$0x30] %vm307_vm14, %v4720_v12   ;;  %v2144_v23 = vsel %vm29_vm6, %v3009_v6, %v2140_v18  ;;  %v2945_v27 = vld [vmem:[%s5489_s0 + $0x1cc] sm:$0x80]   ;;  %vm467_vm9 = vcmask 884560   ;;  %v2200_v31 = vsel %vm5_vm0, %v3019_v29, %v3018_v28  ;;  %s3206_s30 = smov 38  }
  0xa1   :  { %314 = vst.msk [vmem:[#allocation0 + $0x12] sm:$0xc0] %vm307_vm14, %v4720_v12   ;;  %2145 = vrot.lane.b32.xlu1 %v2144_v23, %s3205_s15  ;;  %v1812_v12 = vsel %vm17_vm3, %v2942_v20, %v1808_v25  ;;  %v3020_v32 = vld [vmem:[%s5489_s0 + $0x47] sm:$0x4]   ;;  %v3026_v45 = vld [vmem:[%s5489_s0 + $0x8] sm:$0x1]  }
  0xa2   :  { %348 = vst.msk [vmem:[#allocation0] sm:$0x3] %vm347_vm15, %v4749_v24   ;;  %v1816_v10 = vsel %vm21_vm4, %v2943_v21, %v1812_v12  ;;  %v3021_v33 = vld [vmem:[%s5489_s0 + $0x146] sm:$0x8]   ;;  %v2204_v35 = vsel %vm9_vm1, %v3020_v32, %v2200_v31  ;;  %v3027_v46 = vld [vmem:[%s5489_s0 + $0x107] sm:$0x2]  }
  0xa3   :  { %350 = vst.msk [vmem:[#allocation0 + $0x6] sm:$0xc] %vm347_vm15, %v4749_v24   ;;  %v1820_v30 = vsel %vm25_vm5, %v2944_v26, %v1816_v10  ;;  %v3022_v36 = vld [vmem:[%s5489_s0 + $0x85] sm:$0x10]   ;;  %v2240_v48 = vsel %vm5_vm0, %v3027_v46, %v3026_v45  ;;  %v3028_v49 = vld [vmem:[%s5489_s0 + $0x46] sm:$0x4]   ;;  %v5001_v61 = vpop.permute.xlu2 %745  }
  0xa4   :  { %352 = vst.msk [vmem:[#allocation0 + $0xc] sm:$0x30] %vm347_vm15, %v4749_v24   ;;  %v1824_v34 = vsel %vm29_vm6, %v2945_v27, %v1820_v30  ;;  %v3023_v37 = vld [vmem:[%s5489_s0 + $0x184] sm:$0x20]   ;;  %v4949_v38 = vpop.permute.xlu0 %665   ;;  %v3029_v50 = vld [vmem:[%s5489_s0 + $0x145] sm:$0x8]   ;;  %v2244_v54 = vsel %vm9_vm1, %v3028_v49, %v2240_v48 }
  0xa5   :  { %354 = vst.msk [vmem:[#allocation0 + $0x12] sm:$0xc0] %vm347_vm15, %v4749_v24   ;;  %1825 = vrot.lane.b32.xlu2 %v1824_v34, %s3206_s30  ;;  %v2208_v24 = vsel %vm13_vm2, %v3021_v33, %v2204_v35  ;;  %v3024_v41 = vld [vmem:[%s5489_s0 + $0xc3] sm:$0x40]   ;;  %v4979_v51 = vpop.permute.xlu1 %705   ;;  %v3030_v55 = vld [vmem:[%s5489_s0 + $0x84] sm:$0x10]   ;;  %v2248_v56 = vsel %vm13_vm2, %v3029_v50, %v2244_v54 }
  0xa6   :  { %v3025_v42 = vld [vmem:[%s5489_s0 + $0x1c2] sm:$0x80]   ;;  %388 = vst.msk [vmem:[#allocation0] sm:$0x3] %vm387_vm7, %v4722_v13   ;;  %v2212_v43 = vsel %vm17_vm3, %v3022_v36, %v2208_v24  ;;  %v3031_v57 = vld [vmem:[%s5489_s0 + $0x183] sm:$0x20]   ;;  %v2252_v59 = vsel %vm17_vm3, %v3030_v55, %v2248_v56 }
  0xa7   :  { %390 = vst.msk [vmem:[#allocation0 + $0x6] sm:$0xc] %vm387_vm7, %v4722_v13   ;;  %v2216_v47 = vsel %vm21_vm4, %v3023_v37, %v2212_v43  ;;  %v3032_v58 = vld [vmem:[%s5489_s0 + $0xc2] sm:$0x40]   ;;  %vm507_vm10 = vcmask 868160   ;;  %s3207_s22 = smov 18   ;;  %v2256_v63 = vsel %vm21_vm4, %v3031_v57, %v2252_v59 }
  0xa8   :  { %392 = vst.msk [vmem:[#allocation0 + $0xc] sm:$0x30] %vm387_vm7, %v4722_v13   ;;  %v2220_v52 = vsel %vm25_vm5, %v3024_v41, %v2216_v47  ;;  %v3033_v60 = vld [vmem:[%s5489_s0 + $0x1c1] sm:$0x80]   ;;  %v2962_v62 = vld [vmem:[%s5489_s0 + $0x10] sm:$0x1]   ;;  %v2260_v2 = vsel %vm25_vm5, %v3032_v58, %v2256_v63 }
  0xa9   :  { %394 = vst.msk [vmem:[#allocation0 + $0x12] sm:$0xc0] %vm387_vm7, %v4722_v13   ;;  %v2224_v13 = vsel %vm29_vm6, %v3025_v42, %v2220_v52  ;;  %v2963_v0 = vld [vmem:[%s5489_s0 + $0x10f] sm:$0x2]   ;;  %s3208_s8 = smov 16   ;;  %vm547_vm11 = vcmask 851760  }
  0xaa   :  { %428 = vst.msk [vmem:[#allocation0] sm:$0x3] %vm427_vm8, %v4792_v39   ;;  %2225 = vrot.lane.b32.xlu0 %v2224_v13, %s3207_s22  ;;  %v2964_v1 = vld [vmem:[%s5489_s0 + $0x4e] sm:$0x4]   ;;  %v1920_v3 = vsel %vm5_vm0, %v2963_v0, %v2962_v62  ;;  %vm587_vm12 = vcmask 835360   ;;  %s3209_s25 = smov 32  }
  0xab   :  { %430 = vst.msk [vmem:[#allocation0 + $0x6] sm:$0xc] %vm427_vm8, %v4792_v39   ;;  %v2965_v4 = vld [vmem:[%s5489_s0 + $0x14d] sm:$0x8]   ;;  %v1924_v6 = vsel %vm9_vm1, %v2964_v1, %v1920_v3  ;;  %v3042_v17 = vld [vmem:[%s5489_s0 + $0x6] sm:$0x1]   ;;  %v5111_v24 = vpop.permute.xlu2 %865  }
  0xac   :  { %432 = vst.msk [vmem:[#allocation0 + $0xc] sm:$0x30] %vm427_vm8, %v4792_v39   ;;  %v2966_v5 = vld [vmem:[%s5489_s0 + $0x8c] sm:$0x10]   ;;  %v1928_v9 = vsel %vm13_vm2, %v2965_v4, %v1924_v6  ;;  %v5044_v15 = vpop.permute.xlu0 %785   ;;  %v3043_v19 = vld [vmem:[%s5489_s0 + $0x105] sm:$0x2]  }
  0xad   :  { %434 = vst.msk [vmem:[#allocation0 + $0x12] sm:$0xc0] %vm427_vm8, %v4792_v39   ;;  %v2264_v39 = vsel %vm29_vm6, %v3033_v60, %v2260_v2  ;;  %v2967_v40 = vld [vmem:[%s5489_s0 + $0x18b] sm:$0x20]   ;;  %v1932_v16 = vsel %vm17_vm3, %v2966_v5, %v1928_v9  ;;  %v3044_v20 = vld [vmem:[%s5489_s0 + $0x44] sm:$0x4]   ;;  %v2320_v21 = vsel %vm5_vm0, %v3043_v19, %v3042_v17  ;;  %v5071_v26 = vpop.permute.xlu1 %825  }
  0xae   :  { %v2968_v8 = vld [vmem:[%s5489_s0 + $0xca] sm:$0x40]   ;;  %468 = vst.msk [vmem:[#allocation0] sm:$0x3] %vm467_vm9, %v4825_v53   ;;  %2265 = vrot.lane.b32.xlu1 %v2264_v39, %s3208_s8  ;;  %v1936_v18 = vsel %vm21_vm4, %v2967_v40, %v1932_v16  ;;  %v3045_v23 = vld [vmem:[%s5489_s0 + $0x143] sm:$0x8]   ;;  %v2324_v27 = vsel %vm9_vm1, %v3044_v20, %v2320_v21 }
  0xaf   :  { %v2969_v14 = vld [vmem:[%s5489_s0 + $0x1c9] sm:$0x80]   ;;  %470 = vst.msk [vmem:[#allocation0 + $0x6] sm:$0xc] %vm467_vm9, %v4825_v53   ;;  %v3046_v25 = vld [vmem:[%s5489_s0 + $0x82] sm:$0x10]   ;;  %v2328_v29 = vsel %vm13_vm2, %v3045_v23, %v2324_v27 }
  0xb0   :  { %472 = vst.msk [vmem:[#allocation0 + $0xc] sm:$0x30] %vm467_vm9, %v4825_v53   ;;  %v3047_v10 = vld [vmem:[%s5489_s0 + $0x181] sm:$0x20]   ;;  %v3050_v31 = vld [vmem:[%s5489_s0 + $0x5] sm:$0x1]   ;;  %v2332_v32 = vsel %vm17_vm3, %v3046_v25, %v2328_v29 }
  0xb1   :  { %474 = vst.msk [vmem:[#allocation0 + $0x12] sm:$0xc0] %vm467_vm9, %v4825_v53   ;;  %v1940_v53 = vsel %vm25_vm5, %v2968_v8, %v1936_v18  ;;  %v3048_v28 = vld [vmem:[%s5489_s0 + $0xc0] sm:$0x40]   ;;  %v3051_v33 = vld [vmem:[%s5489_s0 + $0x104] sm:$0x2]  }
  0xb2   :  { %508 = vst.msk [vmem:[#allocation0] sm:$0x3] %vm507_vm10, %v4803_v44   ;;  %v1944_v12 = vsel %vm29_vm6, %v2969_v14, %v1940_v53  ;;  %v3049_v30 = vld [vmem:[%s5489_s0 + $0x1bf] sm:$0x80]   ;;  %v3052_v34 = vld [vmem:[%s5489_s0 + $0x43] sm:$0x4]   ;;  %v2360_v35 = vsel %vm5_vm0, %v3051_v33, %v3050_v31 }
  0xb3   :  { %510 = vst.msk [vmem:[#allocation0 + $0x6] sm:$0xc] %vm507_vm10, %v4803_v44   ;;  %1945 = vrot.lane.b32.xlu2 %v1944_v12, %s3209_s25  ;;  %v3053_v36 = vld [vmem:[%s5489_s0 + $0x142] sm:$0x8]   ;;  %v2364_v42 = vsel %vm9_vm1, %v3052_v34, %v2360_v35  ;;  %vm627_vm13 = vcmask 818960   ;;  %s3210_s15 = smov 12   ;;  %v5223_v23 = vpop.permute.xlu2 %985  }
  0xb4   :  { %512 = vst.msk [vmem:[#allocation0 + $0xc] sm:$0x30] %vm507_vm10, %v4803_v44   ;;  %v3054_v37 = vld [vmem:[%s5489_s0 + $0x81] sm:$0x10]   ;;  %v2368_v47 = vsel %vm13_vm2, %v3053_v36, %v2364_v42  ;;  %v2986_v50 = vld [vmem:[%s5489_s0 + $0xd] sm:$0x1]   ;;  %v5149_v13 = vpop.permute.xlu0 %905  }
  0xb5   :  { %514 = vst.msk [vmem:[#allocation0 + $0x12] sm:$0xc0] %vm507_vm10, %v4803_v44   ;;  %v2336_v44 = vsel %vm21_vm4, %v3047_v10, %v2332_v32  ;;  %v3055_v43 = vld [vmem:[%s5489_s0 + $0x180] sm:$0x20]   ;;  %v2372_v49 = vsel %vm17_vm3, %v3054_v37, %v2368_v47  ;;  %v2987_v52 = vld [vmem:[%s5489_s0 + $0x10c] sm:$0x2]   ;;  %v5183_v5 = vpop.permute.xlu1 %945  }
  0xb6   :  { %548 = vst.msk [vmem:[#allocation0] sm:$0x3] %vm547_vm11, %v4872_v7   ;;  %v2340_v41 = vsel %vm25_vm5, %v3048_v28, %v2336_v44  ;;  %v3056_v45 = vld [vmem:[%s5489_s0 + $0xbf] sm:$0x40]   ;;  %v2040_v54 = vsel %vm5_vm0, %v2987_v52, %v2986_v50  ;;  %v2988_v55 = vld [vmem:[%s5489_s0 + $0x4b] sm:$0x4]  }
  0xb7   :  { %550 = vst.msk [vmem:[#allocation0 + $0x6] sm:$0xc] %vm547_vm11, %v4872_v7   ;;  %v2344_v46 = vsel %vm29_vm6, %v3049_v30, %v2340_v41  ;;  %v3057_v48 = vld [vmem:[%s5489_s0 + $0x1be] sm:$0x80]   ;;  %v2989_v57 = vld [vmem:[%s5489_s0 + $0x14a] sm:$0x8]   ;;  %v2044_v58 = vsel %vm9_vm1, %v2988_v55, %v2040_v54 }
  0xb8   :  { %552 = vst.msk [vmem:[#allocation0 + $0xc] sm:$0x30] %vm547_vm11, %v4872_v7   ;;  %2345 = vrot.lane.b32.xlu0 %v2344_v46, %s3210_s15  ;;  %v2990_v60 = vld [vmem:[%s5489_s0 + $0x89] sm:$0x10]   ;;  %v2048_v63 = vsel %vm13_vm2, %v2989_v57, %v2044_v58  ;;  %s3211_s3 = smov 10   ;;  %vm667_vm14 = vcmask 802560  }
  0xb9   :  { %554 = vst.msk [vmem:[#allocation0 + $0x12] sm:$0xc0] %vm547_vm11, %v4872_v7   ;;  %v2376_v7 = vsel %vm21_vm4, %v3055_v43, %v2372_v49  ;;  %v2991_v59 = vld [vmem:[%s5489_s0 + $0x188] sm:$0x20]   ;;  %v2052_v2 = vsel %vm17_vm3, %v2990_v60, %v2048_v63  ;;  %vm707_vm15 = vcmask 786160   ;;  %s3212_s16 = smov 26  }
  0xba   :  { %588 = vst.msk [vmem:[#allocation0] sm:$0x3] %vm587_vm12, %v4905_v22   ;;  %v2380_v56 = vsel %vm25_vm5, %v3056_v45, %v2376_v7  ;;  %v2992_v0 = vld [vmem:[%s5489_s0 + $0xc7] sm:$0x40]   ;;  %v3066_v3 = vld [vmem:[%s5489_s0 + $0x3] sm:$0x1]  }
  0xbb   :  { %590 = vst.msk [vmem:[#allocation0 + $0x6] sm:$0xc] %vm587_vm12, %v4905_v22   ;;  %v2384_v62 = vsel %vm29_vm6, %v3057_v48, %v2380_v56  ;;  %v2993_v1 = vld [vmem:[%s5489_s0 + $0x1c6] sm:$0x80]   ;;  %v3067_v4 = vld [vmem:[%s5489_s0 + $0x102] sm:$0x2]  }
  0xbc   :  { %592 = vst.msk [vmem:[#allocation0 + $0xc] sm:$0x30] %vm587_vm12, %v4905_v22   ;;  %2385 = vrot.lane.b32.xlu1 %v2384_v62, %s3211_s3  ;;  %v2440_v6 = vsel %vm5_vm0, %v3067_v4, %v3066_v3  ;;  %v3068_v40 = vld [vmem:[%s5489_s0 + $0x41] sm:$0x4]   ;;  %v3074_v53 = vld [vmem:[%s5489_s0 + $0x2] sm:$0x1]   ;;  %v5261_v36 = vpop.permute.xlu0 %1025  }
  0xbd   :  { %594 = vst.msk [vmem:[#allocation0 + $0x12] sm:$0xc0] %vm587_vm12, %v4905_v22   ;;  %v2056_v22 = vsel %vm21_vm4, %v2991_v59, %v2052_v2  ;;  %v3069_v8 = vld [vmem:[%s5489_s0 + $0x140] sm:$0x8]   ;;  %v2444_v14 = vsel %vm9_vm1, %v3068_v40, %v2440_v6  ;;  %v3075_v21 = vld [vmem:[%s5489_s0 + $0x101] sm:$0x2]   ;;  %v5298_v54 = vpop.permute.xlu1 %1065  }
  0xbe   :  { %628 = vst.msk [vmem:[#allocation0] sm:$0x3] %vm627_vm13, %v4883_v11   ;;  %v2060_v39 = vsel %vm25_vm5, %v2992_v0, %v2056_v22  ;;  %v3070_v16 = vld [vmem:[%s5489_s0 + $0x7f] sm:$0x10]   ;;  %v2448_v18 = vsel %vm13_vm2, %v3069_v8, %v2444_v14  ;;  %v2480_v12 = vsel %vm5_vm0, %v3075_v21, %v3074_v53  ;;  %v3076_v27 = vld [vmem:[%s5489_s0 + $0x40] sm:$0x4]   ;;  %v5332_v22 = vpop.permute.xlu2 %1105  }
  0xbf   :  { %630 = vst.msk [vmem:[#allocation0 + $0x6] sm:$0xc] %vm627_vm13, %v4883_v11   ;;  %v2064_v9 = vsel %vm29_vm6, %v2993_v1, %v2060_v39  ;;  %v3071_v17 = vld [vmem:[%s5489_s0 + $0x17e] sm:$0x20]   ;;  %v3077_v10 = vld [vmem:[%s5489_s0 + $0x13f] sm:$0x8]   ;;  %v2484_v29 = vsel %vm9_vm1, %v3076_v27, %v2480_v12 }
  0xc0   :  { %632 = vst.msk [vmem:[#allocation0 + $0xc] sm:$0x30] %vm627_vm13, %v4883_v11   ;;  %2065 = vrot.lane.b32.xlu2 %v2064_v9, %s3212_s16  ;;  %v3072_v19 = vld [vmem:[%s5489_s0 + $0xbd] sm:$0x40]   ;;  %v3078_v30 = vld [vmem:[%s5489_s0 + $0x7e] sm:$0x10]   ;;  %v2488_v33 = vsel %vm13_vm2, %v3077_v10, %v2484_v29 }
  0xc1   :  { %v3073_v20 = vld [vmem:[%s5489_s0 + $0x1bc] sm:$0x80]   ;;  %634 = vst.msk [vmem:[#allocation0 + $0x12] sm:$0xc0] %vm627_vm13, %v4883_v11   ;;  %v2452_v11 = vsel %vm17_vm3, %v3070_v16, %v2448_v18  ;;  %v3079_v31 = vld [vmem:[%s5489_s0 + $0x17d] sm:$0x20]  }
  0xc2   :  { %668 = vst.msk [vmem:[#allocation0] sm:$0x3] %vm667_vm14, %v4949_v38   ;;  %v2456_v25 = vsel %vm21_vm4, %v3071_v17, %v2452_v11  ;;  %v3080_v34 = vld [vmem:[%s5489_s0 + $0xbc] sm:$0x40]   ;;  %vm747_vm7 = vcmask 769760   ;;  %s3213_s8 = smov 6  }
  0xc3   :  { %670 = vst.msk [vmem:[#allocation0 + $0x6] sm:$0xc] %vm667_vm14, %v4949_v38   ;;  %v2460_v28 = vsel %vm25_vm5, %v3072_v19, %v2456_v25  ;;  %v3081_v44 = vld [vmem:[%s5489_s0 + $0x1bb] sm:$0x80]   ;;  %v3010_v35 = vld [vmem:[%s5489_s0 + $0xa] sm:$0x1]  }
  0xc4   :  { %672 = vst.msk [vmem:[#allocation0 + $0xc] sm:$0x30] %vm667_vm14, %v4949_v38   ;;  %v2464_v32 = vsel %vm29_vm6, %v3073_v20, %v2460_v28  ;;  %v3011_v41 = vld [vmem:[%s5489_s0 + $0x109] sm:$0x2]   ;;  %s3214_s21 = smov 4   ;;  %vm787_vm8 = vcmask 753360   ;;  %v5368_v19 = vpop.permute.xlu0 %1145  }
  0xc5   :  { %674 = vst.msk [vmem:[#allocation0 + $0x12] sm:$0xc0] %vm667_vm14, %v4949_v38   ;;  %2465 = vrot.lane.b32.xlu0 %v2464_v32, %s3213_s8  ;;  %v2492_v38 = vsel %vm17_vm3, %v3078_v30, %v2488_v33  ;;  %v3012_v42 = vld [vmem:[%s5489_s0 + $0x48] sm:$0x4]   ;;  %v2160_v45 = vsel %vm5_vm0, %v3011_v41, %v3010_v35  ;;  %v3034_v57 = vld [vmem:[%s5489_s0 + $0x7] sm:$0x1]   ;;  %v5398_v29 = vpop.permute.xlu1 %1185  }
  0xc6   :  { %708 = vst.msk [vmem:[#allocation0] sm:$0x3] %vm707_vm15, %v4979_v51   ;;  %v2496_v37 = vsel %vm21_vm4, %v3079_v31, %v2492_v38  ;;  %v3013_v46 = vld [vmem:[%s5489_s0 + $0x147] sm:$0x8]   ;;  %v2164_v49 = vsel %vm9_vm1, %v3012_v42, %v2160_v45  ;;  %v3035_v58 = vld [vmem:[%s5489_s0 + $0x106] sm:$0x2]  }
  0xc7   :  { %710 = vst.msk [vmem:[#allocation0 + $0x6] sm:$0xc] %vm707_vm15, %v4979_v51   ;;  %v2500_v43 = vsel %vm25_vm5, %v3080_v34, %v2496_v37  ;;  %v3014_v47 = vld [vmem:[%s5489_s0 + $0x86] sm:$0x10]   ;;  %v3036_v60 = vld [vmem:[%s5489_s0 + $0x45] sm:$0x4]   ;;  %v2280_v62 = vsel %vm5_vm0, %v3035_v58, %v3034_v57 }
  0xc8   :  { %712 = vst.msk [vmem:[#allocation0 + $0xc] sm:$0x30] %vm707_vm15, %v4979_v51   ;;  %v2504_v48 = vsel %vm29_vm6, %v3081_v44, %v2500_v43  ;;  %v3015_v50 = vld [vmem:[%s5489_s0 + $0x185] sm:$0x20]   ;;  %v3037_v63 = vld [vmem:[%s5489_s0 + $0x144] sm:$0x8]   ;;  %v2284_v1 = vsel %vm9_vm1, %v3036_v60, %v2280_v62 }
  0xc9   :  { %714 = vst.msk [vmem:[#allocation0 + $0x12] sm:$0xc0] %vm707_vm15, %v4979_v51   ;;  %2505 = vrot.lane.b32.xlu1 %v2504_v48, %s3214_s21  ;;  %v2168_v51 = vsel %vm13_vm2, %v3013_v46, %v2164_v49  ;;  %v3016_v52 = vld [vmem:[%s5489_s0 + $0xc4] sm:$0x40]   ;;  %v3038_v0 = vld [vmem:[%s5489_s0 + $0x83] sm:$0x10]   ;;  %v2288_v3 = vsel %vm13_vm2, %v3037_v63, %v2284_v1 }
  0xca   :  { %v3017_v7 = vld [vmem:[%s5489_s0 + $0x1c3] sm:$0x80]   ;;  %748 = vst.msk [vmem:[#allocation0] sm:$0x3] %vm747_vm7, %v5001_v61   ;;  %v2172_v55 = vsel %vm17_vm3, %v3014_v47, %v2168_v51  ;;  %v3039_v2 = vld [vmem:[%s5489_s0 + $0x182] sm:$0x20]   ;;  %v2292_v39 = vsel %vm17_vm3, %v3038_v0, %v2288_v3 }
  0xcb   :  { %750 = vst.msk [vmem:[#allocation0 + $0x6] sm:$0xc] %vm747_vm7, %v5001_v61   ;;  %v2176_v56 = vsel %vm21_vm4, %v3015_v50, %v2172_v55  ;;  %s3215_s9 = smov 20   ;;  %vm827_vm9 = vcmask 736960   ;;  %v3040_v4 = vld [vmem:[%s5489_s0 + $0xc1] sm:$0x40]   ;;  %v2296_v8 = vsel %vm21_vm4, %v3039_v2, %v2292_v39 }
  0xcc   :  { %752 = vst.msk [vmem:[#allocation0 + $0xc] sm:$0x30] %vm747_vm7, %v5001_v61   ;;  %v2180_v59 = vsel %vm25_vm5, %v3016_v52, %v2176_v56  ;;  %v3041_v6 = vld [vmem:[%s5489_s0 + $0x1c0] sm:$0x80]   ;;  %v3058_v40 = vld [vmem:[%s5489_s0 + $0x4] sm:$0x1]   ;;  %v1266_v43 = vpop.permute.xlu0 %1265  }
  0xcd   :  { %754 = vst.msk [vmem:[#allocation0 + $0x12] sm:$0xc0] %vm747_vm7, %v5001_v61   ;;  %v2184_v61 = vsel %vm29_vm6, %v3017_v7, %v2180_v59  ;;  %v3059_v9 = vld [vmem:[%s5489_s0 + $0x103] sm:$0x2]   ;;  %vm867_vm10 = vcmask 720560   ;;  %s3216_s5 = smov 14  }
  0xce   :  { %2185 = vrot.lane.b32.xlu2 %v2184_v61, %s3215_s9  ;;  %788 = vst.msk [vmem:[#allocation0] sm:$0x3] %vm787_vm8, %v5044_v15   ;;  %v3060_v14 = vld [vmem:[%s5489_s0 + $0x42] sm:$0x4]   ;;  %v2400_v16 = vsel %vm5_vm0, %v3059_v9, %v3058_v40  ;;  %v3082_v27 = vld [vmem:[%s5489_s0 + $0x1] sm:$0x1]  }
  0xcf   :  { %790 = vst.msk [vmem:[#allocation0 + $0x6] sm:$0xc] %vm787_vm8, %v5044_v15   ;;  %v3061_v17 = vld [vmem:[%s5489_s0 + $0x141] sm:$0x8]   ;;  %v2404_v20 = vsel %vm9_vm1, %v3060_v14, %v2400_v16  ;;  %v3083_v10 = vld [vmem:[%s5489_s0 + $0x100] sm:$0x2]  }
  0xd0   :  { %792 = vst.msk [vmem:[#allocation0 + $0xc] sm:$0x30] %vm787_vm8, %v5044_v15   ;;  %v3062_v18 = vld [vmem:[%s5489_s0 + $0x80] sm:$0x10]   ;;  %v2408_v21 = vsel %vm13_vm2, %v3061_v17, %v2404_v20  ;;  %v3084_v28 = vld [vmem:[%s5489_s0 + $0x3f] sm:$0x4]   ;;  %v2520_v30 = vsel %vm5_vm0, %v3083_v10, %v3082_v27 }
  0xd1   :  { %794 = vst.msk [vmem:[#allocation0 + $0x12] sm:$0xc0] %vm787_vm8, %v5044_v15   ;;  %v2300_v15 = vsel %vm25_vm5, %v3040_v4, %v2296_v8  ;;  %v3063_v11 = vld [vmem:[%s5489_s0 + $0x17f] sm:$0x20]   ;;  %v2412_v25 = vsel %vm17_vm3, %v3062_v18, %v2408_v21  ;;  %v3085_v31 = vld [vmem:[%s5489_s0 + $0x13e] sm:$0x8]   ;;  %v2524_v32 = vsel %vm9_vm1, %v3084_v28, %v2520_v30 }
  0xd2   :  { %828 = vst.msk [vmem:[#allocation0] sm:$0x3] %vm827_vm9, %v5071_v26   ;;  %v2304_v53 = vsel %vm29_vm6, %v3041_v6, %v2300_v15  ;;  %v3064_v12 = vld [vmem:[%s5489_s0 + $0xbe] sm:$0x40]   ;;  %vm907_vm0 = vcmask 704160   ;;  %v2528_v38 = vsel %vm13_vm2, %v3085_v31, %v2524_v32  ;;  %vm947_vm1 = vcmask 687760  }
  0xd3   :  { %830 = vst.msk [vmem:[#allocation0 + $0x6] sm:$0xc] %vm827_vm9, %v5071_v26   ;;  %v3086_v33 = vld [vmem:[%s5489_s0 + $0x7d] sm:$0x10]   ;;  %v3065_v44 = vld [vmem:[%s5489_s0 + $0x1bd] sm:$0x80]  }
  0xd4   :  { %832 = vst.msk [vmem:[#allocation0 + $0xc] sm:$0x30] %vm827_vm9, %v5071_v26   ;;  %v2532_v35 = vsel %vm17_vm3, %v3086_v33, %v2528_v38  ;;  %v3087_v37 = vld [vmem:[%s5489_s0 + $0x17c] sm:$0x20]   ;;  %s3217_s16 = smov 8   ;;  %vm987_vm2 = vcmask 671360  }
  0xd5   :  { %834 = vst.msk [vmem:[#allocation0 + $0x12] sm:$0xc0] %vm827_vm9, %v5071_v26   ;;  %v2416_v26 = vsel %vm21_vm4, %v3063_v11, %v2412_v25  ;;  %v3088_v42 = vld [vmem:[%s5489_s0 + $0xbb] sm:$0x40]   ;;  %vm1027_vm3 = vcmask 654960   ;;  %vm1187_vm11 = vcmask 589360  }
  0xd6   :  { %868 = vst.msk [vmem:[#allocation0] sm:$0x3] %vm867_vm10, %v5111_v24   ;;  %2305 = vrot.lane.b32.xlu2 %v2304_v53, %s3216_s5  ;;  %v2420_v34 = vsel %vm25_vm5, %v3064_v12, %v2416_v26  ;;  %v3089_v46 = vld [vmem:[%s5489_s0 + $0x1ba] sm:$0x80]   ;;  %s3218_s0 = smov 2   ;;  %vm1227_vm12 = vcmask 572960  }
  0xd7   :  { %870 = vst.msk [vmem:[#allocation0 + $0x6] sm:$0xc] %vm867_vm10, %v5111_v24   ;;  %v2424_v41 = vsel %vm29_vm6, %v3065_v44, %v2420_v34  ;;  %vm1267_vm13 = vcmask 556560   ;;  %vm1307_vm14 = vcmask 540160   ;;  %vm1347_vm15 = vcmask 523760  }
  0xd8   :  { %872 = vst.msk [vmem:[#allocation0 + $0xc] sm:$0x30] %vm867_vm10, %v5111_v24   ;;  %vm1387_vm7 = vcmask 507360   ;;  %vm1427_vm8 = vcmask 490960   ;;  %vm1467_vm9 = vcmask 474560  }
  0xd9   :  { %874 = vst.msk [vmem:[#allocation0 + $0x12] sm:$0xc0] %vm867_vm10, %v5111_v24   ;;  %v5421_v24 = vpop.permute.xlu2 %1225   ;;  %vm1507_vm10 = vcmask 458160  }
  0xda   :  { %908 = vst.msk [vmem:[#allocation0] sm:$0x3] %vm907_vm0, %v5149_v13  }
  0xdb   :  { %910 = vst.msk [vmem:[#allocation0 + $0x6] sm:$0xc] %vm907_vm0, %v5149_v13  }
  0xdc   :  { %912 = vst.msk [vmem:[#allocation0 + $0xc] sm:$0x30] %vm907_vm0, %v5149_v13  }
  0xdd   :  { %914 = vst.msk [vmem:[#allocation0 + $0x12] sm:$0xc0] %vm907_vm0, %v5149_v13   ;;  %v2536_v13 = vsel %vm21_vm4, %v3087_v37, %v2532_v35  ;;  %vm1067_vm4 = vcmask 638560   ;;  %vm1547_vm0 = vcmask 441760  }
  0xde   :  { %948 = vst.msk [vmem:[#allocation0] sm:$0x3] %vm947_vm1, %v5183_v5   ;;  %2425 = vrot.lane.b32.xlu2 %v2424_v41, %s3217_s16  ;;  %v2540_v45 = vsel %vm25_vm5, %v3088_v42, %v2536_v13  ;;  %vm1107_vm5 = vcmask 622160  }
  0xdf   :  { %950 = vst.msk [vmem:[#allocation0 + $0x6] sm:$0xc] %vm947_vm1, %v5183_v5   ;;  %v2544_v47 = vsel %vm29_vm6, %v3089_v46, %v2540_v45  ;;  %vm1147_vm6 = vcmask 605760  }
  0xe0   :  { %952 = vst.msk [vmem:[#allocation0 + $0xc] sm:$0x30] %vm947_vm1, %v5183_v5  }
  0xe1   :  { %954 = vst.msk [vmem:[#allocation0 + $0x12] sm:$0xc0] %vm947_vm1, %v5183_v5   ;;  %v1306_v5 = vpop.permute.xlu1 %1305   ;;  %vm1587_vm1 = vcmask 425360  }
  0xe2   :  { %988 = vst.msk [vmem:[#allocation0] sm:$0x3] %vm987_vm2, %v5223_v23  }
  0xe3   :  { %990 = vst.msk [vmem:[#allocation0 + $0x6] sm:$0xc] %vm987_vm2, %v5223_v23  }
  0xe4   :  { %992 = vst.msk [vmem:[#allocation0 + $0xc] sm:$0x30] %vm987_vm2, %v5223_v23  }
  0xe5   :  { %994 = vst.msk [vmem:[#allocation0 + $0x12] sm:$0xc0] %vm987_vm2, %v5223_v23   ;;  %v1346_v23 = vpop.permute.xlu2 %1345   ;;  %vm1627_vm2 = vcmask 408960  }
  0xe6   :  { %1028 = vst.msk [vmem:[#allocation0] sm:$0x3] %vm1027_vm3, %v5261_v36   ;;  %2545 = vrot.lane.b32.xlu2 %v2544_v47, %s3218_s0 }
  0xe7   :  { %1030 = vst.msk [vmem:[#allocation0 + $0x6] sm:$0xc] %vm1027_vm3, %v5261_v36  }
  0xe8   :  { %1032 = vst.msk [vmem:[#allocation0 + $0xc] sm:$0x30] %vm1027_vm3, %v5261_v36  }
  0xe9   :  { %1034 = vst.msk [vmem:[#allocation0 + $0x12] sm:$0xc0] %vm1027_vm3, %v5261_v36   ;;  %v1386_v36 = vpop.permute.xlu0 %1385   ;;  %v1426_v48 = vpop.permute.xlu1 %1425   ;;  %vm1667_vm3 = vcmask 392560  }
  0xea   :  { %1068 = vst.msk [vmem:[#allocation0] sm:$0x3] %vm1067_vm4, %v5298_v54  }
  0xeb   :  { %1070 = vst.msk [vmem:[#allocation0 + $0x6] sm:$0xc] %vm1067_vm4, %v5298_v54  }
  0xec   :  { %1072 = vst.msk [vmem:[#allocation0 + $0xc] sm:$0x30] %vm1067_vm4, %v5298_v54  }
  0xed   :  { %1074 = vst.msk [vmem:[#allocation0 + $0x12] sm:$0xc0] %vm1067_vm4, %v5298_v54   ;;  %v1466_v49 = vpop.permute.xlu2 %1465   ;;  %vm1707_vm4 = vcmask 376160  }
  0xee   :  { %1108 = vst.msk [vmem:[#allocation0] sm:$0x3] %vm1107_vm5, %v5332_v22  }
  0xef   :  { %1110 = vst.msk [vmem:[#allocation0 + $0x6] sm:$0xc] %vm1107_vm5, %v5332_v22  }
  0xf0   :  { %1112 = vst.msk [vmem:[#allocation0 + $0xc] sm:$0x30] %vm1107_vm5, %v5332_v22  }
  0xf1   :  { %1114 = vst.msk [vmem:[#allocation0 + $0x12] sm:$0xc0] %vm1107_vm5, %v5332_v22   ;;  %v1506_v50 = vpop.permute.xlu0 %1505   ;;  %v1546_v51 = vpop.permute.xlu1 %1545   ;;  %vm1747_vm5 = vcmask 359760  }
  0xf2   :  { %1148 = vst.msk [vmem:[#allocation0] sm:$0x3] %vm1147_vm6, %v5368_v19  }
  0xf3   :  { %1150 = vst.msk [vmem:[#allocation0 + $0x6] sm:$0xc] %vm1147_vm6, %v5368_v19  }
  0xf4   :  { %1152 = vst.msk [vmem:[#allocation0 + $0xc] sm:$0x30] %vm1147_vm6, %v5368_v19  }
  0xf5   :  { %1154 = vst.msk [vmem:[#allocation0 + $0x12] sm:$0xc0] %vm1147_vm6, %v5368_v19   ;;  %v1586_v52 = vpop.permute.xlu2 %1585   ;;  %vm1787_vm6 = vcmask 343360  }
  0xf6   :  { %1188 = vst.msk [vmem:[#allocation0] sm:$0x3] %vm1187_vm11, %v5398_v29  }
  0xf7   :  { %1190 = vst.msk [vmem:[#allocation0 + $0x6] sm:$0xc] %vm1187_vm11, %v5398_v29  }
  0xf8   :  { %1192 = vst.msk [vmem:[#allocation0 + $0xc] sm:$0x30] %vm1187_vm11, %v5398_v29  }
  0xf9   :  { %1194 = vst.msk [vmem:[#allocation0 + $0x12] sm:$0xc0] %vm1187_vm11, %v5398_v29   ;;  %v1626_v7 = vpop.permute.xlu0 %1625   ;;  %v1666_v54 = vpop.permute.xlu1 %1665   ;;  %vm1827_vm11 = vcmask 326960  }
  0xfa   :  { %1228 = vst.msk [vmem:[#allocation0] sm:$0x3] %vm1227_vm12, %v5421_v24  }
  0xfb   :  { %1230 = vst.msk [vmem:[#allocation0 + $0x6] sm:$0xc] %vm1227_vm12, %v5421_v24  }
  0xfc   :  { %1232 = vst.msk [vmem:[#allocation0 + $0xc] sm:$0x30] %vm1227_vm12, %v5421_v24  }
  0xfd   :  { %1234 = vst.msk [vmem:[#allocation0 + $0x12] sm:$0xc0] %vm1227_vm12, %v5421_v24   ;;  %v1706_v55 = vpop.permute.xlu2 %1705   ;;  %vm1867_vm12 = vcmask 310560  }
  0xfe   :  { %1268 = vst.msk [vmem:[#allocation0] sm:$0x3] %vm1267_vm13, %v1266_v43  }
  0xff   :  { %1270 = vst.msk [vmem:[#allocation0 + $0x6] sm:$0xc] %vm1267_vm13, %v1266_v43  }
 0x100   :  { %1272 = vst.msk [vmem:[#allocation0 + $0xc] sm:$0x30] %vm1267_vm13, %v1266_v43  }
 0x101   :  { %1274 = vst.msk [vmem:[#allocation0 + $0x12] sm:$0xc0] %vm1267_vm13, %v1266_v43   ;;  %v1746_v57 = vpop.permute.xlu0 %1745   ;;  %v1786_v56 = vpop.permute.xlu1 %1785   ;;  %vm1907_vm13 = vcmask 294160  }
 0x102   :  { %1308 = vst.msk [vmem:[#allocation0] sm:$0x3] %vm1307_vm14, %v1306_v5  }
 0x103   :  { %1310 = vst.msk [vmem:[#allocation0 + $0x6] sm:$0xc] %vm1307_vm14, %v1306_v5  }
 0x104   :  { %1312 = vst.msk [vmem:[#allocation0 + $0xc] sm:$0x30] %vm1307_vm14, %v1306_v5  }
 0x105   :  { %1314 = vst.msk [vmem:[#allocation0 + $0x12] sm:$0xc0] %vm1307_vm14, %v1306_v5   ;;  %v1826_v58 = vpop.permute.xlu2 %1825   ;;  %vm1947_vm14 = vcmask 277760  }
 0x106   :  { %1348 = vst.msk [vmem:[#allocation0] sm:$0x3] %vm1347_vm15, %v1346_v23  }
 0x107   :  { %1350 = vst.msk [vmem:[#allocation0 + $0x6] sm:$0xc] %vm1347_vm15, %v1346_v23  }
 0x108   :  { %1352 = vst.msk [vmem:[#allocation0 + $0xc] sm:$0x30] %vm1347_vm15, %v1346_v23  }
 0x109   :  { %1354 = vst.msk [vmem:[#allocation0 + $0x12] sm:$0xc0] %vm1347_vm15, %v1346_v23   ;;  %v1866_v60 = vpop.permute.xlu0 %1865   ;;  %v1906_v59 = vpop.permute.xlu1 %1905   ;;  %vm1987_vm15 = vcmask 261360  }
 0x10a   :  { %1388 = vst.msk [vmem:[#allocation0] sm:$0x3] %vm1387_vm7, %v1386_v36  }
 0x10b   :  { %1390 = vst.msk [vmem:[#allocation0 + $0x6] sm:$0xc] %vm1387_vm7, %v1386_v36  }
 0x10c   :  { %1392 = vst.msk [vmem:[#allocation0 + $0xc] sm:$0x30] %vm1387_vm7, %v1386_v36  }
 0x10d   :  { %1394 = vst.msk [vmem:[#allocation0 + $0x12] sm:$0xc0] %vm1387_vm7, %v1386_v36   ;;  %v1946_v62 = vpop.permute.xlu2 %1945   ;;  %vm2027_vm7 = vcmask 244960  }
 0x10e   :  { %1428 = vst.msk [vmem:[#allocation0] sm:$0x3] %vm1427_vm8, %v1426_v48  }
 0x10f   :  { %1430 = vst.msk [vmem:[#allocation0 + $0x6] sm:$0xc] %vm1427_vm8, %v1426_v48  }
 0x110   :  { %1432 = vst.msk [vmem:[#allocation0 + $0xc] sm:$0x30] %vm1427_vm8, %v1426_v48  }
 0x111   :  { %1434 = vst.msk [vmem:[#allocation0 + $0x12] sm:$0xc0] %vm1427_vm8, %v1426_v48   ;;  %v1986_v63 = vpop.permute.xlu0 %1985   ;;  %v2026_v0 = vpop.permute.xlu1 %2025   ;;  %vm2067_vm8 = vcmask 228560  }
 0x112   :  { %1468 = vst.msk [vmem:[#allocation0] sm:$0x3] %vm1467_vm9, %v1466_v49  }
 0x113   :  { %1470 = vst.msk [vmem:[#allocation0 + $0x6] sm:$0xc] %vm1467_vm9, %v1466_v49  }
 0x114   :  { %1472 = vst.msk [vmem:[#allocation0 + $0xc] sm:$0x30] %vm1467_vm9, %v1466_v49  }
 0x115   :  { %1474 = vst.msk [vmem:[#allocation0 + $0x12] sm:$0xc0] %vm1467_vm9, %v1466_v49   ;;  %vm2107_vm9 = vcmask 212160  }
 0x116   :  { %1508 = vst.msk [vmem:[#allocation0] sm:$0x3] %vm1507_vm10, %v1506_v50  }
 0x117   :  { %1510 = vst.msk [vmem:[#allocation0 + $0x6] sm:$0xc] %vm1507_vm10, %v1506_v50  }
 0x118   :  { %1512 = vst.msk [vmem:[#allocation0 + $0xc] sm:$0x30] %vm1507_vm10, %v1506_v50  }
 0x119   :  { %1514 = vst.msk [vmem:[#allocation0 + $0x12] sm:$0xc0] %vm1507_vm10, %v1506_v50   ;;  %v2106_v1 = vpop.permute.xlu0 %2105   ;;  %v2146_v2 = vpop.permute.xlu1 %2145   ;;  %vm2147_vm10 = vcmask 195760  }
 0x11a   :  { %1548 = vst.msk [vmem:[#allocation0] sm:$0x3] %vm1547_vm0, %v1546_v51   ;;  %v2066_v61 = vpop.permute.xlu2 %2065  }
 0x11b   :  { %1550 = vst.msk [vmem:[#allocation0 + $0x6] sm:$0xc] %vm1547_vm0, %v1546_v51  }
 0x11c   :  { %1552 = vst.msk [vmem:[#allocation0 + $0xc] sm:$0x30] %vm1547_vm0, %v1546_v51  }
 0x11d   :  { %1554 = vst.msk [vmem:[#allocation0 + $0x12] sm:$0xc0] %vm1547_vm0, %v1546_v51   ;;  %vm2187_vm0 = vcmask 179360  }
 0x11e   :  { %1588 = vst.msk [vmem:[#allocation0] sm:$0x3] %vm1587_vm1, %v1586_v52  }
 0x11f   :  { %1590 = vst.msk [vmem:[#allocation0 + $0x6] sm:$0xc] %vm1587_vm1, %v1586_v52  }
 0x120   :  { %1592 = vst.msk [vmem:[#allocation0 + $0xc] sm:$0x30] %vm1587_vm1, %v1586_v52  }
 0x121   :  { %1594 = vst.msk [vmem:[#allocation0 + $0x12] sm:$0xc0] %vm1587_vm1, %v1586_v52   ;;  %v2226_v3 = vpop.permute.xlu0 %2225   ;;  %v2266_v4 = vpop.permute.xlu1 %2265   ;;  %vm2227_vm1 = vcmask 162960  }
 0x122   :  { %1628 = vst.msk [vmem:[#allocation0] sm:$0x3] %vm1627_vm2, %v1626_v7  }
 0x123   :  { %1630 = vst.msk [vmem:[#allocation0 + $0x6] sm:$0xc] %vm1627_vm2, %v1626_v7  }
 0x124   :  { %1632 = vst.msk [vmem:[#allocation0 + $0xc] sm:$0x30] %vm1627_vm2, %v1626_v7  }
 0x125   :  { %1634 = vst.msk [vmem:[#allocation0 + $0x12] sm:$0xc0] %vm1627_vm2, %v1626_v7   ;;  %vm2267_vm2 = vcmask 146560  }
 0x126   :  { %1668 = vst.msk [vmem:[#allocation0] sm:$0x3] %vm1667_vm3, %v1666_v54  }
 0x127   :  { %1670 = vst.msk [vmem:[#allocation0 + $0x6] sm:$0xc] %vm1667_vm3, %v1666_v54  }
 0x128   :  { %1672 = vst.msk [vmem:[#allocation0 + $0xc] sm:$0x30] %vm1667_vm3, %v1666_v54   ;;  %v2186_v22 = vpop.permute.xlu2 %2185  }
 0x129   :  { %1674 = vst.msk [vmem:[#allocation0 + $0x12] sm:$0xc0] %vm1667_vm3, %v1666_v54   ;;  %vm2307_vm3 = vcmask 130160  }
 0x12a   :  { %1708 = vst.msk [vmem:[#allocation0] sm:$0x3] %vm1707_vm4, %v1706_v55   ;;  %v2346_v6 = vpop.permute.xlu0 %2345  }
 0x12b   :  { %1710 = vst.msk [vmem:[#allocation0 + $0x6] sm:$0xc] %vm1707_vm4, %v1706_v55  }
 0x12c   :  { %1712 = vst.msk [vmem:[#allocation0 + $0xc] sm:$0x30] %vm1707_vm4, %v1706_v55  }
 0x12d   :  { %1714 = vst.msk [vmem:[#allocation0 + $0x12] sm:$0xc0] %vm1707_vm4, %v1706_v55   ;;  %vm2347_vm4 = vcmask 113760  }
 0x12e   :  { %1748 = vst.msk [vmem:[#allocation0] sm:$0x3] %vm1747_vm5, %v1746_v57   ;;  %v2386_v40 = vpop.permute.xlu1 %2385  }
 0x12f   :  { %1750 = vst.msk [vmem:[#allocation0 + $0x6] sm:$0xc] %vm1747_vm5, %v1746_v57  }
 0x130   :  { %1752 = vst.msk [vmem:[#allocation0 + $0xc] sm:$0x30] %vm1747_vm5, %v1746_v57   ;;  %v2306_v39 = vpop.permute.xlu2 %2305  }
 0x131   :  { %1754 = vst.msk [vmem:[#allocation0 + $0x12] sm:$0xc0] %vm1747_vm5, %v1746_v57   ;;  %vm2387_vm5 = vcmask 97360  }
 0x132   :  { %1788 = vst.msk [vmem:[#allocation0] sm:$0x3] %vm1787_vm6, %v1786_v56  }
 0x133   :  { %1790 = vst.msk [vmem:[#allocation0 + $0x6] sm:$0xc] %vm1787_vm6, %v1786_v56  }
 0x134   :  { %1792 = vst.msk [vmem:[#allocation0 + $0xc] sm:$0x30] %vm1787_vm6, %v1786_v56  }
 0x135   :  { %1794 = vst.msk [vmem:[#allocation0 + $0x12] sm:$0xc0] %vm1787_vm6, %v1786_v56   ;;  %vm2427_vm6 = vcmask 80960  }
 0x136   :  { %1828 = vst.msk [vmem:[#allocation0] sm:$0x3] %vm1827_vm11, %v1826_v58  }
 0x137   :  { %1830 = vst.msk [vmem:[#allocation0 + $0x6] sm:$0xc] %vm1827_vm11, %v1826_v58   ;;  %v2466_v9 = vpop.permute.xlu0 %2465  }
 0x138   :  { %1832 = vst.msk [vmem:[#allocation0 + $0xc] sm:$0x30] %vm1827_vm11, %v1826_v58   ;;  %v2426_v8 = vpop.permute.xlu2 %2425  }
 0x139   :  { %1834 = vst.msk [vmem:[#allocation0 + $0x12] sm:$0xc0] %vm1827_vm11, %v1826_v58   ;;  %vm2467_vm11 = vcmask 64560  }
 0x13a   :  { %1868 = vst.msk [vmem:[#allocation0] sm:$0x3] %vm1867_vm12, %v1866_v60  }
 0x13b   :  { %1870 = vst.msk [vmem:[#allocation0 + $0x6] sm:$0xc] %vm1867_vm12, %v1866_v60   ;;  %v2506_v14 = vpop.permute.xlu1 %2505  }
 0x13c   :  { %1872 = vst.msk [vmem:[#allocation0 + $0xc] sm:$0x30] %vm1867_vm12, %v1866_v60  }
 0x13d   :  { %1874 = vst.msk [vmem:[#allocation0 + $0x12] sm:$0xc0] %vm1867_vm12, %v1866_v60   ;;  %vm2507_vm12 = vcmask 48160  }
 0x13e   :  { %1908 = vst.msk [vmem:[#allocation0] sm:$0x3] %vm1907_vm13, %v1906_v59  }
 0x13f   :  { %1910 = vst.msk [vmem:[#allocation0 + $0x6] sm:$0xc] %vm1907_vm13, %v1906_v59  }
 0x140   :  { %1912 = vst.msk [vmem:[#allocation0 + $0xc] sm:$0x30] %vm1907_vm13, %v1906_v59   ;;  %v2546_v15 = vpop.permute.xlu2 %2545  }
 0x141   :  { %1914 = vst.msk [vmem:[#allocation0 + $0x12] sm:$0xc0] %vm1907_vm13, %v1906_v59   ;;  %vm2547_vm13 = vcmask 31760  }
 0x142   :  { %1948 = vst.msk [vmem:[#allocation0] sm:$0x3] %vm1947_vm14, %v1946_v62  }
 0x143   :  { %1950 = vst.msk [vmem:[#allocation0 + $0x6] sm:$0xc] %vm1947_vm14, %v1946_v62  }
 0x144   :  { %1952 = vst.msk [vmem:[#allocation0 + $0xc] sm:$0x30] %vm1947_vm14, %v1946_v62  }
 0x145   :  { %1954 = vst.msk [vmem:[#allocation0 + $0x12] sm:$0xc0] %vm1947_vm14, %v1946_v62  }
 0x146   :  { %1988 = vst.msk [vmem:[#allocation0] sm:$0x3] %vm1987_vm15, %v1986_v63  }
 0x147   :  { %1990 = vst.msk [vmem:[#allocation0 + $0x6] sm:$0xc] %vm1987_vm15, %v1986_v63  }
 0x148   :  { %1992 = vst.msk [vmem:[#allocation0 + $0xc] sm:$0x30] %vm1987_vm15, %v1986_v63  }
 0x149   :  { %1994 = vst.msk [vmem:[#allocation0 + $0x12] sm:$0xc0] %vm1987_vm15, %v1986_v63  }
 0x14a   :  { %2028 = vst.msk [vmem:[#allocation0] sm:$0x3] %vm2027_vm7, %v2026_v0  }
 0x14b   :  { %2030 = vst.msk [vmem:[#allocation0 + $0x6] sm:$0xc] %vm2027_vm7, %v2026_v0  }
 0x14c   :  { %2032 = vst.msk [vmem:[#allocation0 + $0xc] sm:$0x30] %vm2027_vm7, %v2026_v0  }
 0x14d   :  { %2034 = vst.msk [vmem:[#allocation0 + $0x12] sm:$0xc0] %vm2027_vm7, %v2026_v0  }
 0x14e   :  { %2068 = vst.msk [vmem:[#allocation0] sm:$0x3] %vm2067_vm8, %v2066_v61  }
 0x14f   :  { %2070 = vst.msk [vmem:[#allocation0 + $0x6] sm:$0xc] %vm2067_vm8, %v2066_v61  }
 0x150   :  { %2072 = vst.msk [vmem:[#allocation0 + $0xc] sm:$0x30] %vm2067_vm8, %v2066_v61  }
 0x151   :  { %2074 = vst.msk [vmem:[#allocation0 + $0x12] sm:$0xc0] %vm2067_vm8, %v2066_v61  }
 0x152   :  { %2108 = vst.msk [vmem:[#allocation0] sm:$0x3] %vm2107_vm9, %v2106_v1  }
 0x153   :  { %2110 = vst.msk [vmem:[#allocation0 + $0x6] sm:$0xc] %vm2107_vm9, %v2106_v1  }
 0x154   :  { %2112 = vst.msk [vmem:[#allocation0 + $0xc] sm:$0x30] %vm2107_vm9, %v2106_v1  }
 0x155   :  { %2114 = vst.msk [vmem:[#allocation0 + $0x12] sm:$0xc0] %vm2107_vm9, %v2106_v1  }
 0x156   :  { %2148 = vst.msk [vmem:[#allocation0] sm:$0x3] %vm2147_vm10, %v2146_v2  }
 0x157   :  { %2150 = vst.msk [vmem:[#allocation0 + $0x6] sm:$0xc] %vm2147_vm10, %v2146_v2  }
 0x158   :  { %2152 = vst.msk [vmem:[#allocation0 + $0xc] sm:$0x30] %vm2147_vm10, %v2146_v2  }
 0x159   :  { %2154 = vst.msk [vmem:[#allocation0 + $0x12] sm:$0xc0] %vm2147_vm10, %v2146_v2  }
 0x15a   :  { %2188 = vst.msk [vmem:[#allocation0] sm:$0x3] %vm2187_vm0, %v2186_v22  }
 0x15b   :  { %2190 = vst.msk [vmem:[#allocation0 + $0x6] sm:$0xc] %vm2187_vm0, %v2186_v22  }
 0x15c   :  { %2192 = vst.msk [vmem:[#allocation0 + $0xc] sm:$0x30] %vm2187_vm0, %v2186_v22  }
 0x15d   :  { %2194 = vst.msk [vmem:[#allocation0 + $0x12] sm:$0xc0] %vm2187_vm0, %v2186_v22  }
 0x15e   :  { %2228 = vst.msk [vmem:[#allocation0] sm:$0x3] %vm2227_vm1, %v2226_v3  }
 0x15f   :  { %2230 = vst.msk [vmem:[#allocation0 + $0x6] sm:$0xc] %vm2227_vm1, %v2226_v3  }
 0x160   :  { %2232 = vst.msk [vmem:[#allocation0 + $0xc] sm:$0x30] %vm2227_vm1, %v2226_v3  }
 0x161   :  { %2234 = vst.msk [vmem:[#allocation0 + $0x12] sm:$0xc0] %vm2227_vm1, %v2226_v3  }
 0x162   :  { %2268 = vst.msk [vmem:[#allocation0] sm:$0x3] %vm2267_vm2, %v2266_v4  }
 0x163   :  { %2270 = vst.msk [vmem:[#allocation0 + $0x6] sm:$0xc] %vm2267_vm2, %v2266_v4  }
 0x164   :  { %2272 = vst.msk [vmem:[#allocation0 + $0xc] sm:$0x30] %vm2267_vm2, %v2266_v4  }
 0x165   :  { %2274 = vst.msk [vmem:[#allocation0 + $0x12] sm:$0xc0] %vm2267_vm2, %v2266_v4  }
 0x166   :  { %2308 = vst.msk [vmem:[#allocation0] sm:$0x3] %vm2307_vm3, %v2306_v39  }
 0x167   :  { %2310 = vst.msk [vmem:[#allocation0 + $0x6] sm:$0xc] %vm2307_vm3, %v2306_v39  }
 0x168   :  { %2312 = vst.msk [vmem:[#allocation0 + $0xc] sm:$0x30] %vm2307_vm3, %v2306_v39  }
 0x169   :  { %2314 = vst.msk [vmem:[#allocation0 + $0x12] sm:$0xc0] %vm2307_vm3, %v2306_v39  }
 0x16a   :  { %2348 = vst.msk [vmem:[#allocation0] sm:$0x3] %vm2347_vm4, %v2346_v6  }
 0x16b   :  { %2350 = vst.msk [vmem:[#allocation0 + $0x6] sm:$0xc] %vm2347_vm4, %v2346_v6  }
 0x16c   :  { %2352 = vst.msk [vmem:[#allocation0 + $0xc] sm:$0x30] %vm2347_vm4, %v2346_v6  }
 0x16d   :  { %2354 = vst.msk [vmem:[#allocation0 + $0x12] sm:$0xc0] %vm2347_vm4, %v2346_v6  }
 0x16e   :  { %2388 = vst.msk [vmem:[#allocation0] sm:$0x3] %vm2387_vm5, %v2386_v40  }
 0x16f   :  { %2390 = vst.msk [vmem:[#allocation0 + $0x6] sm:$0xc] %vm2387_vm5, %v2386_v40  }
 0x170   :  { %2392 = vst.msk [vmem:[#allocation0 + $0xc] sm:$0x30] %vm2387_vm5, %v2386_v40  }
 0x171   :  { %2394 = vst.msk [vmem:[#allocation0 + $0x12] sm:$0xc0] %vm2387_vm5, %v2386_v40  }
 0x172   :  { %2428 = vst.msk [vmem:[#allocation0] sm:$0x3] %vm2427_vm6, %v2426_v8  }
 0x173   :  { %2430 = vst.msk [vmem:[#allocation0 + $0x6] sm:$0xc] %vm2427_vm6, %v2426_v8  }
 0x174   :  { %2432 = vst.msk [vmem:[#allocation0 + $0xc] sm:$0x30] %vm2427_vm6, %v2426_v8  }
 0x175   :  { %2434 = vst.msk [vmem:[#allocation0 + $0x12] sm:$0xc0] %vm2427_vm6, %v2426_v8  }
 0x176   :  { %2468 = vst.msk [vmem:[#allocation0] sm:$0x3] %vm2467_vm11, %v2466_v9  }
 0x177   :  { %2470 = vst.msk [vmem:[#allocation0 + $0x6] sm:$0xc] %vm2467_vm11, %v2466_v9  }
 0x178   :  { %2472 = vst.msk [vmem:[#allocation0 + $0xc] sm:$0x30] %vm2467_vm11, %v2466_v9  }
 0x179   :  { %2474 = vst.msk [vmem:[#allocation0 + $0x12] sm:$0xc0] %vm2467_vm11, %v2466_v9  }
 0x17a   :  { %2508 = vst.msk [vmem:[#allocation0] sm:$0x3] %vm2507_vm12, %v2506_v14  }
 0x17b   :  { %2510 = vst.msk [vmem:[#allocation0 + $0x6] sm:$0xc] %vm2507_vm12, %v2506_v14  }
 0x17c   :  { %2512 = vst.msk [vmem:[#allocation0 + $0xc] sm:$0x30] %vm2507_vm12, %v2506_v14  }
 0x17d   :  { %2514 = vst.msk [vmem:[#allocation0 + $0x12] sm:$0xc0] %vm2507_vm12, %v2506_v14  }
 0x17e   :  { %2548 = vst.msk [vmem:[#allocation0] sm:$0x3] %vm2547_vm13, %v2546_v15  }
 0x17f   :  { %2550 = vst.msk [vmem:[#allocation0 + $0x6] sm:$0xc] %vm2547_vm13, %v2546_v15  }
 0x180   :  { %2552 = vst.msk [vmem:[#allocation0 + $0xc] sm:$0x30] %vm2547_vm13, %v2546_v15  }
 0x181   :  { %2554 = vst.msk [vmem:[#allocation0 + $0x12] sm:$0xc0] %vm2547_vm13, %v2546_v15  }
 0x185   :  { %v2557_v16 = vld [vmem:[#allocation0] sm:$0x3] }
 0x186   :  { %2560 = vst [vmem:[%s5490_s1] sm:$0x3] %v2557_v16  ;;  %v2562_v17 = vld [vmem:[#allocation0 + $0x8] sm:$0x3] }
 0x187   :  { %3090 = vst [vmem:[%s5490_s1 + $0x2] sm:$0x3] %v2562_v17  ;;  %v2568_v18 = vld [vmem:[#allocation0 + $0x10] sm:$0x3] }
 0x188   :  { %3091 = vst [vmem:[%s5490_s1 + $0x4] sm:$0x3] %v2568_v18  ;;  %v2574_v19 = vld [vmem:[#allocation0 + $0x18] sm:$0x3] }
 0x189   :  { %3092 = vst [vmem:[%s5490_s1 + $0x6] sm:$0x3] %v2574_v19 }

// kernel: forward.1
= control target key start
LH: loop header
LB: loop body
LE: loop exit
PB: predicated region body
PF: predicated region fallthrough
CT: control target
= control target key end

     0   :  { %v14_v0 = vlaneseq  ;;  %vm81_vm0 = vcmask 1041408   ;;  %vm83_vm1 = vcmask 1045508   ;;  %vm85_vm2 = vcmask 1043456   ;;  %s156_s1 = inlined_call_operand.vmem [shape: f32[2,512], index: 1, kind: input, shape index: {}]   ;;  %s157_s0 = inlined_call_operand.vmem [shape: f32[2,512], index: 0, kind: input, shape index: {}]   ;;  %s158_s2 = inlined_call_operand.vmem [shape: f32[2,512], index: 2, kind: input, shape index: {}]   ;;  %s159_s3 = inlined_call_operand.vmem [shape: f32[2,512], index: 3, kind: output, shape index: {}]  }
   0x1   :  { %v89_v56 = vld [vmem:[%s156_s1] sm:$0xff] }
   0x2   :  { %v15_v1 = vand.u32 127, %v14_v0  ;;  %v73_v63 = vld [vmem:[%s157_s0] sm:$0xff] }
   0x4   :  { %v16_v2 = vadd.s32 128, %v15_v1  ;;  %v17_v3 = vadd.s32 256, %v15_v1  ;;  %v18_v4 = vadd.s32 384, %v15_v1  ;;  %v25_v5 = vcvt.s32.f32 %v15_v1 }
   0x6   :  { %v26_v6 = vcvt.s32.f32 %v16_v2  ;;  %v27_v7 = vcvt.s32.f32 %v17_v3  ;;  %v28_v8 = vcvt.s32.f32 %v18_v4  ;;  %v29_v9 = vmul.f32 0.5, %v25_v5  ;;  %v103_v5 = vld [vmem:[%s158_s2] sm:$0xff] }
   0x8   :  { %v30_v10 = vmul.f32 0.5, %v26_v6  ;;  %v31_v11 = vmul.f32 0.5, %v27_v7  ;;  %v32_v12 = vmul.f32 0.5, %v28_v8  ;;  %v33_v13 = vfloor.f32 %v29_v9 }
   0xa   :  { %v34_v14 = vfloor.f32 %v30_v10  ;;  %v35_v15 = vfloor.f32 %v31_v11  ;;  %v36_v16 = vfloor.f32 %v32_v12  ;;  %v37_v17 = vadd.f32 0.5, %v33_v13 }
   0xc   :  { %v38_v18 = vadd.f32 0.5, %v34_v14  ;;  %v39_v19 = vadd.f32 0.5, %v35_v15  ;;  %v40_v20 = vadd.f32 0.5, %v36_v16  ;;  %v41_v21 = vmul.f32 0.0625, %v37_v17 }
   0xe   :  { %v42_v22 = vmul.f32 0.0625, %v38_v18  ;;  %v43_v23 = vmul.f32 0.0625, %v39_v19  ;;  %v44_v24 = vmul.f32 0.0625, %v40_v20  ;;  %v45_v25 = vfloor.f32 %v41_v21 }
  0x10   :  { %v46_v26 = vfloor.f32 %v42_v22  ;;  %v47_v27 = vfloor.f32 %v43_v23  ;;  %v48_v28 = vfloor.f32 %v44_v24  ;;  %v49_v29 = vmul.f32 16.0, %v45_v25 }
  0x11   :  { %v65_v30 = vmul.f32 0.13333334, %v45_v25 }
  0x12   :  { %v50_v31 = vmul.f32 16.0, %v46_v26  ;;  %v51_v32 = vmul.f32 16.0, %v47_v27  ;;  %v52_v33 = vmul.f32 16.0, %v48_v28  ;;  %v53_v34 = vsub.f32 %v33_v13, %v49_v29 }
  0x13   :  { %v66_v35 = vmul.f32 0.13333334, %v46_v26  ;;  %v67_v36 = vmul.f32 0.13333334, %v47_v27  ;;  %v68_v37 = vmul.f32 0.13333334, %v48_v28 }
  0x14   :  { %v54_v38 = vsub.f32 %v34_v14, %v50_v31  ;;  %v55_v39 = vsub.f32 %v35_v15, %v51_v32  ;;  %v56_v40 = vsub.f32 %v36_v16, %v52_v33  ;;  %v57_v41 = vmul.f32 0.13333334, %v53_v34 }
  0x15   :  { %v114_v42 = vadd.f32 -1.0, %v65_v30  ;;  %v115_v43 = vadd.f32 -1.0, %v66_v35  ;;  %v116_v44 = vadd.f32 -1.0, %v67_v36  ;;  %v117_v45 = vadd.f32 -1.0, %v68_v37 }
  0x16   :  { %v58_v46 = vmul.f32 0.13333334, %v54_v38  ;;  %v59_v47 = vmul.f32 0.13333334, %v55_v39  ;;  %v60_v48 = vmul.f32 0.13333334, %v56_v40 }
  0x17   :  { %v94_v49 = vrot.slane %v115_v43, 6  ;;  %v95_v50 = vrot.slane %v116_v44, 4  ;;  %v96_v51 = vrot.slane %v117_v45, 2  ;;  %v110_v52 = vadd.f32 -1.0, %v57_v41 }
  0x18   :  { %v111_v53 = vadd.f32 -1.0, %v58_v46  ;;  %v112_v54 = vadd.f32 -1.0, %v59_v47  ;;  %v113_v55 = vadd.f32 -1.0, %v60_v48 }
  0x19   :  { %v97_v57 = vsel %vm81_vm0, %v114_v42, %v94_v49  ;;  %v98_v58 = vsel %vm83_vm1, %v95_v50, %v96_v51 }
  0x1a   :  { %v78_v59 = vrot.slane %v111_v53, 6  ;;  %v79_v60 = vrot.slane %v112_v54, 4  ;;  %v80_v61 = vrot.slane %v113_v55, 2  ;;  %v99_v62 = vsel %vm85_vm2, %v97_v57, %v98_v58 }
  0x1b   :  { %v101_v2 = vmul.f32 %v99_v62, %v89_v56 }
  0x1c   :  { %v82_v0 = vsel %vm81_vm0, %v110_v52, %v78_v59  ;;  %v84_v1 = vsel %vm83_vm1, %v79_v60, %v80_v61 }
  0x1d   :  { %v86_v3 = vsel %vm85_vm2, %v82_v0, %v84_v1 }
  0x1e   :  { %v88_v4 = vmul.f32 %v86_v3, %v73_v63 }
  0x20   :  { %v102_v6 = vadd.f32 %v101_v2, %v88_v4 }
  0x22   :  { %v104_v7 = vadd.f32 %v103_v5, %v102_v6 }
  0x24   :  { %105 = vst [vmem:[%s159_s3] sm:$0xff] %v104_v7 }

</bundles_post_ra>
